<compile_context>
chip_gen: v7x
topology: tpu7x:2x2x1
jax: 0.10.0
libtpu: 0.0.40
codegen_flags: <defaults>
</compile_context>

<pallas_src>
import functools

import jax
import jax.numpy as jnp
from jax import lax
from jax.experimental import pallas as pl
from jax.experimental.pallas import tpu as pltpu


# ----------------------------- Pallas kernel --------------------------------
def condense_kernel(tokens_ref, mask_ref,
                    w_ih_ref, b_ih_ref,          # (D, 8H), (1, 8H)   [fwd | bwd]
                    w_hh_f_ref, w_hh_b_ref,      # (H, 8H) each, zero-padded halves
                    w_acls_ref, b_acls_ref,      # (H, A+S), (1, A+S) [asp | adv]
                    w_sen_ref, b_sen_ref,        # (H, S),  (1, S)
                    asp_emb_ref, sen_emb_ref,    # (A, H),  (S, H)
                    out_ref,                     # (B, OUT_W) packed lane-dense
                    xg_ref,                      # scratch VMEM (T*B, 8H)
                    *, T, B, H, A, S):
    f32 = jnp.float32
    G = 8 * H

    # ---- hoisted input projection (both directions, bias folded) ----------
    xg_ref[...] = (jnp.dot(tokens_ref[...], w_ih_ref[...],
                           preferred_element_type=f32) + b_ih_ref[...])

    w_hh_f = w_hh_f_ref[...]
    w_hh_b = w_hh_b_ref[...]

    # Lane selector: lanes [0, 4H) carry the forward gates, [4H, 8H) backward.
    lane = lax.broadcasted_iota(jnp.int32, (B, G), 1)
    is_fwd_lane = lane < (4 * H)

    # ---- fused bidirectional recurrence ------------------------------------
    def step(i, carry):
        h_f, c_f, h_b, c_b, acc_f, acc_b = carry
        j = T - 1 - i
        rf = pl.ds(pl.multiple_of(i * B, B), B)   # rows for forward time i
        rb = pl.ds(pl.multiple_of(j * B, B), B)   # rows for backward time T-1-i

        # One (B, 8H) gates vreg covering both directions.
        xg = jnp.where(is_fwd_lane, xg_ref[rf, :], xg_ref[rb, :])
        gates = (xg
                 + jnp.dot(h_f, w_hh_f, preferred_element_type=f32)
                 + jnp.dot(h_b, w_hh_b, preferred_element_type=f32))

        # Whole-vreg activations, then slice (PyTorch gate order i, f, g, o).
        sig = jax.nn.sigmoid(gates)
        th = jnp.tanh(gates)
        i_f, f_f = sig[:, 0:H], sig[:, H:2 * H]
        g_f, o_f = th[:, 2 * H:3 * H], sig[:, 3 * H:4 * H]
        i_b, f_b = sig[:, 4 * H:5 * H], sig[:, 5 * H:6 * H]
        g_b, o_b = th[:, 6 * H:7 * H], sig[:, 7 * H:8 * H]

        c_f = f_f * c_f + i_f * g_f
        c_b = f_b * c_b + i_b * g_b
        h_f = o_f * jnp.tanh(c_f)
        h_b = o_b * jnp.tanh(c_b)

        acc_f = acc_f + mask_ref[rf, :] * h_f
        acc_b = acc_b + mask_ref[rb, :] * h_b
        return (h_f, c_f, h_b, c_b, acc_f, acc_b)

    z = jnp.zeros((B, H), f32)
    _, _, _, _, a_doc, s_doc = lax.fori_loop(
        0, T, step, (z, z, z, z, z, z), unroll=True)

    # ---- classifiers / softmaxes / embeddings (epilogue) --------------------
    def softmax(x):
        e = jnp.exp(x - jnp.max(x, axis=-1, keepdims=True))
        return e * pl.reciprocal(jnp.sum(e, axis=-1, keepdims=True), approx=True)

    # Fused aspect + adversarial classifier (both consume a_doc).
    logits_aa = (jnp.dot(a_doc, w_acls_ref[...], preferred_element_type=f32)
                 + b_acls_ref[...])
    logits_s = (jnp.dot(s_doc, w_sen_ref[...], preferred_element_type=f32)
                + b_sen_ref[...])

    prob_a = softmax(logits_aa[:, 0:A])
    adv_prob_s = softmax(logits_aa[:, A:A + S])   # reverse_gradient is identity fwd
    prob_s = softmax(logits_s)

    aspect = jnp.dot(prob_a, asp_emb_ref[...], preferred_element_type=f32)
    sentiment = jnp.dot(prob_s, sen_emb_ref[...], preferred_element_type=f32)

    # ---- single lane-dense packed output ------------------------------------
    out_ref[...] = jnp.zeros_like(out_ref)
    out_ref[:, 0:H] = a_doc
    out_ref[:, H:2 * H] = s_doc
    out_ref[:, 2 * H:3 * H] = aspect
    out_ref[:, 3 * H:4 * H] = sentiment
    out_ref[:, 4 * H:4 * H + S] = prob_s
    out_ref[:, 5 * H:5 * H + S] = adv_prob_s


# ------------------------------ JAX wrapper ----------------------------------
def condense_forward(tokens, mask, params):
    """tokens: (B, T, input_dim) float32, mask: (B, T) float32."""
    B, T, D = tokens.shape
    H = params["w_hh_f"].shape[0]
    A = params["w_asp"].shape[1]
    S = params["w_sen"].shape[1]

    # Time-major, flattened so the kernel's fused projection is one big matmul.
    tokens_tm = jnp.transpose(tokens, (1, 0, 2)).astype(jnp.float32)
    tokens_flat = tokens_tm.reshape(T * B, D)
    mask_tm = jnp.transpose(mask, (1, 0)).astype(jnp.float32)[:, :, None]
    mask_flat = jnp.broadcast_to(mask_tm, (T, B, H)).reshape(T * B, H)

    # Fused / padded parameter layouts (one-time, outside the kernel).
    zeros4h = jnp.zeros((H, 4 * H), jnp.float32)
    w_ih = jnp.concatenate([params["w_ih_f"], params["w_ih_b"]], axis=1)    # (D, 8H)
    b_ih = jnp.concatenate([params["b_f"], params["b_b"]], axis=1)          # (1, 8H)
    w_hh_f = jnp.concatenate([params["w_hh_f"], zeros4h], axis=1)           # (H, 8H)
    w_hh_b = jnp.concatenate([zeros4h, params["w_hh_b"]], axis=1)           # (H, 8H)
    w_acls = jnp.concatenate([params["w_asp"], params["w_adv"]], axis=1)    # (H, A+S)
    b_acls = jnp.concatenate([params["b_asp"], params["b_adv"]], axis=1)    # (1, A+S)

    out_w = ((5 * H + S + 127) // 128) * 128
    vmem = pl.BlockSpec(memory_space=pltpu.MemorySpace.VMEM)

    packed = pl.pallas_call(
        functools.partial(condense_kernel, T=T, B=B, H=H, A=A, S=S),
        out_shape=jax.ShapeDtypeStruct((B, out_w), jnp.float32),
        in_specs=[vmem] * 12,
        out_specs=vmem,
        scratch_shapes=[pltpu.VMEM((T * B, 8 * H), jnp.float32)],
    )(tokens_flat, mask_flat, w_ih, b_ih, w_hh_f, w_hh_b,
      w_acls, b_acls, params["w_sen"], params["b_sen"],
      params["asp_emb"], params["sen_emb"])

    a_doc = packed[:, 0:H]
    s_doc = packed[:, H:2 * H]
    aspect = packed[:, 2 * H:3 * H]
    sentiment = packed[:, 3 * H:4 * H]
    prob_s = packed[:, 4 * H:4 * H + S]
    adv_prob_s = packed[:, 5 * H:5 * H + S]
    return ((a_doc, s_doc), (aspect, sentiment), prob_s, adv_prob_s)


# ------------------------- pure-JAX reference (check) -------------------------
def condense_reference(tokens, mask, params):
    B, T, _ = tokens.shape
    H = params["w_hh_f"].shape[0]
    hp = functools.partial(jnp.matmul, precision=lax.Precision.HIGHEST)

    def run_dir(w_ih, w_hh, b, reverse):
        h = jnp.zeros((B, H), jnp.float32)
        c = jnp.zeros((B, H), jnp.float32)
        acc = jnp.zeros((B, H), jnp.float32)
        ts = range(T - 1, -1, -1) if reverse else range(T)
        for t in ts:
            gates = hp(tokens[:, t, :], w_ih) + hp(h, w_hh) + b
            i_g = jax.nn.sigmoid(gates[:, 0:H])
            f_g = jax.nn.sigmoid(gates[:, H:2 * H])
            g_g = jnp.tanh(gates[:, 2 * H:3 * H])
            o_g = jax.nn.sigmoid(gates[:, 3 * H:4 * H])
            c = f_g * c + i_g * g_g
            h = o_g * jnp.tanh(c)
            acc = acc + mask[:, t:t + 1] * h
        return acc

    a_doc = run_dir(params["w_ih_f"], params["w_hh_f"], params["b_f"], False)
    s_doc = run_dir(params["w_ih_b"], params["w_hh_b"], params["b_b"], True)
    prob_a = jax.nn.softmax(hp(a_doc, params["w_asp"]) + params["b_asp"], -1)
    prob_s = jax.nn.softmax(hp(s_doc, params["w_sen"]) + params["b_sen"], -1)
    adv_prob_s = jax.nn.softmax(hp(a_doc, params["w_adv"]) + params["b_adv"], -1)
    aspect = hp(prob_a, params["asp_emb"])
    sentiment = hp(prob_s, params["sen_emb"])
    return ((a_doc, s_doc), (aspect, sentiment), prob_s, adv_prob_s)


# --------------------------------- main --------------------------------------
if __name__ == "__main__":
    aspect_dim, sentiment_dim = 4, 3
    input_dim, hidden_dim = 32, 32
    H = hidden_dim // 2
    B, T = 2, 8

    key = jax.random.PRNGKey(0)
    ks = jax.random.split(key, 16)

    def kaiming(k, shape, fan_in):
        return (jax.random.normal(k, shape, jnp.float32)
                * jnp.sqrt(2.0 / fan_in))

    params = {
        # LSTM forward / backward direction (weights in x@W orientation).
        "w_ih_f": kaiming(ks[0], (input_dim, 4 * H), input_dim),
        "w_hh_f": kaiming(ks[1], (H, 4 * H), H),
        "b_f": 0.01 * jax.random.normal(ks[2], (1, 4 * H), jnp.float32),
        "w_ih_b": kaiming(ks[3], (input_dim, 4 * H), input_dim),
        "w_hh_b": kaiming(ks[4], (H, 4 * H), H),
        "b_b": 0.01 * jax.random.normal(ks[5], (1, 4 * H), jnp.float32),
        # Classifiers.
        "w_asp": kaiming(ks[6], (H, aspect_dim), H),
        "b_asp": 0.01 * jax.random.normal(ks[7], (1, aspect_dim), jnp.float32),
        "w_sen": kaiming(ks[8], (H, sentiment_dim), H),
        "b_sen": 0.01 * jax.random.normal(ks[9], (1, sentiment_dim), jnp.float32),
        "w_adv": kaiming(ks[10], (H, sentiment_dim), H),
        "b_adv": 0.01 * jax.random.normal(ks[11], (1, sentiment_dim), jnp.float32),
        # Aspect / sentiment embeddings (kaiming_normal_, fan_in = hidden//2).
        "asp_emb": kaiming(ks[12], (aspect_dim, H), H),
        "sen_emb": kaiming(ks[13], (sentiment_dim, H), H),
    }

    tokens = jax.random.normal(ks[14], (B, T, input_dim), jnp.float32)
    mask = (jax.random.uniform(ks[15], (B, T)) > 0.3).astype(jnp.float32)

    out = condense_forward(tokens, mask, params)
    out = jax.block_until_ready(out)

    ref = condense_reference(tokens, mask, params)
    # Tolerance covers the MXU default-precision dots and the approximate
    # (EUP) reciprocal used for the softmax denominator.
    for got_leaf, ref_leaf in zip(jax.tree_util.tree_leaves(out),
                                  jax.tree_util.tree_leaves(ref)):
        assert jnp.allclose(got_leaf, ref_leaf, rtol=2e-3, atol=2e-3), \
            "Pallas output mismatch vs. pure-JAX reference"

    print("KERNEL_OK")
</pallas_src>

<mosaic_0001>
module attributes {stable_mosaic.version = 11 : i64} {
  func.func @condense_kernel(%arg0: memref<16x32xf32, #tpu.memory_space<vmem>>, %arg1: memref<16x16xf32, #tpu.memory_space<vmem>>, %arg2: memref<32x128xf32, #tpu.memory_space<vmem>>, %arg3: memref<1x128xf32, #tpu.memory_space<vmem>>, %arg4: memref<16x128xf32, #tpu.memory_space<vmem>>, %arg5: memref<16x128xf32, #tpu.memory_space<vmem>>, %arg6: memref<16x7xf32, #tpu.memory_space<vmem>>, %arg7: memref<1x7xf32, #tpu.memory_space<vmem>>, %arg8: memref<16x3xf32, #tpu.memory_space<vmem>>, %arg9: memref<1x3xf32, #tpu.memory_space<vmem>>, %arg10: memref<4x16xf32, #tpu.memory_space<vmem>>, %arg11: memref<3x16xf32, #tpu.memory_space<vmem>>, %arg12: memref<2x128xf32, #tpu.memory_space<vmem>>, %arg13: memref<16x128xf32, #tpu.memory_space<vmem>>) attributes {dimension_semantics = [], scalar_prefetch = 0 : i64, scratch_operands = 1 : i64, tpu.core_type = #tpu.core_type<tc>} {
    %c0 = arith.constant 0 : index
    %c0_0 = arith.constant 0 : index
    %0 = vector.load %arg0[%c0, %c0_0] : memref<16x32xf32, #tpu.memory_space<vmem>>, vector<16x32xf32>
    %c0_1 = arith.constant 0 : index
    %c0_2 = arith.constant 0 : index
    %1 = vector.load %arg2[%c0_1, %c0_2] : memref<32x128xf32, #tpu.memory_space<vmem>>, vector<32x128xf32>
    %cst = arith.constant dense<0.000000e+00> : vector<16x128xf32>
    %2 = tpu.matmul %0, %1, %cst {dimension_numbers = #tpu.dot_dimension_numbers<[1], [0], [0], [1], [0, 0, 1, 1], [], []>} : vector<16x32xf32>, vector<32x128xf32>, vector<16x128xf32> -> vector<16x128xf32>
    %c0_3 = arith.constant 0 : index
    %c0_4 = arith.constant 0 : index
    %3 = vector.load %arg3[%c0_3, %c0_4] : memref<1x128xf32, #tpu.memory_space<vmem>>, vector<1x128xf32>
    %4 = vector.broadcast %3 : vector<1x128xf32> to vector<16x128xf32>
    %5 = arith.addf %2, %4 : vector<16x128xf32>
    %c0_5 = arith.constant 0 : index
    %c0_6 = arith.constant 0 : index
    %6 = vector.load %arg13[%c0_5, %c0_6] : memref<16x128xf32, #tpu.memory_space<vmem>>, vector<16x128xf32>
    tpu.vector_store %arg13[%c0_5, %c0_6], %5 {strides = array<i32>} : memref<16x128xf32, #tpu.memory_space<vmem>>, vector<16x128xf32>,
    %c0_7 = arith.constant 0 : index
    %c0_8 = arith.constant 0 : index
    %7 = vector.load %arg4[%c0_7, %c0_8] : memref<16x128xf32, #tpu.memory_space<vmem>>, vector<16x128xf32>
    %c0_9 = arith.constant 0 : index
    %c0_10 = arith.constant 0 : index
    %8 = vector.load %arg5[%c0_9, %c0_10] : memref<16x128xf32, #tpu.memory_space<vmem>>, vector<16x128xf32>
    %9 = tpu.iota {dimensions = array<i32: 1>} : vector<2x128xi32>
    %c64_i32 = arith.constant 64 : i32
    %10 = vector.broadcast %c64_i32 : i32 to vector<2x128xi32>
    %11 = arith.cmpi slt, %9, %10 : vector<2x128xi32>
    %cst_11 = arith.constant 0.000000e+00 : f32
    %12 = vector.broadcast %cst_11 : f32 to vector<2x16xf32>
    %c0_i32 = arith.constant 0 : i32
    %c7_i32 = arith.constant 7 : i32
    %13 = arith.subi %c7_i32, %c0_i32 : i32
    %c2_i32 = arith.constant 2 : i32
    %14 = arith.muli %c0_i32, %c2_i32 : i32
    %15 = tpu.assume_multiple %14, 2 : i32
    %c2_i32_12 = arith.constant 2 : i32
    %16 = arith.muli %13, %c2_i32_12 : i32
    %17 = tpu.assume_multiple %16, 2 : i32
    %18 = arith.index_cast %15 : i32 to index
    %c0_13 = arith.constant 0 : index
    %19 = vector.load %arg13[%18, %c0_13] : memref<16x128xf32, #tpu.memory_space<vmem>>, vector<2x128xf32>
    %20 = arith.index_cast %17 : i32 to index
    %c0_14 = arith.constant 0 : index
    %21 = vector.load %arg13[%20, %c0_14] : memref<16x128xf32, #tpu.memory_space<vmem>>, vector<2x128xf32>
    %22 = arith.select %11, %19, %21 : vector<2x128xi1>, vector<2x128xf32>
    %cst_15 = arith.constant dense<0.000000e+00> : vector<2x128xf32>
    %23 = tpu.matmul %12, %7, %cst_15 {dimension_numbers = #tpu.dot_dimension_numbers<[1], [0], [0], [1], [0, 0, 1, 1], [], []>} : vector<2x16xf32>, vector<16x128xf32>, vector<2x128xf32> -> vector<2x128xf32>
    %24 = arith.addf %22, %23 : vector<2x128xf32>
    %cst_16 = arith.constant dense<0.000000e+00> : vector<2x128xf32>
    %25 = tpu.matmul %12, %8, %cst_16 {dimension_numbers = #tpu.dot_dimension_numbers<[1], [0], [0], [1], [0, 0, 1, 1], [], []>} : vector<2x16xf32>, vector<16x128xf32>, vector<2x128xf32> -> vector<2x128xf32>
    %26 = arith.addf %24, %25 : vector<2x128xf32>
    %27 = arith.negf %26 : vector<2x128xf32>
    %28 = math.exp %27 : vector<2x128xf32>
    %cst_17 = arith.constant 1.000000e+00 : f32
    %29 = vector.broadcast %cst_17 : f32 to vector<2x128xf32>
    %30 = arith.addf %29, %28 : vector<2x128xf32>
    %31 = arith.divf %29, %30 : vector<2x128xf32>
    %32 = math.tanh %26 : vector<2x128xf32>
    %33 = vector.extract_strided_slice %31 {offsets = [0, 0], sizes = [2, 16], strides = [1, 1]} : vector<2x128xf32> to vector<2x16xf32>
    %34 = vector.extract_strided_slice %31 {offsets = [0, 16], sizes = [2, 16], strides = [1, 1]} : vector<2x128xf32> to vector<2x16xf32>
    %35 = vector.extract_strided_slice %32 {offsets = [0, 32], sizes = [2, 16], strides = [1, 1]} : vector<2x128xf32> to vector<2x16xf32>
    %36 = vector.extract_strided_slice %31 {offsets = [0, 48], sizes = [2, 16], strides = [1, 1]} : vector<2x128xf32> to vector<2x16xf32>
    %37 = vector.extract_strided_slice %31 {offsets = [0, 64], sizes = [2, 16], strides = [1, 1]} : vector<2x128xf32> to vector<2x16xf32>
    %38 = vector.extract_strided_slice %31 {offsets = [0, 80], sizes = [2, 16], strides = [1, 1]} : vector<2x128xf32> to vector<2x16xf32>
    %39 = vector.extract_strided_slice %32 {offsets = [0, 96], sizes = [2, 16], strides = [1, 1]} : vector<2x128xf32> to vector<2x16xf32>
    %40 = vector.extract_strided_slice %31 {offsets = [0, 112], sizes = [2, 16], strides = [1, 1]} : vector<2x128xf32> to vector<2x16xf32>
    %41 = arith.mulf %34, %12 : vector<2x16xf32>
    %42 = arith.mulf %33, %35 : vector<2x16xf32>
    %43 = arith.addf %41, %42 : vector<2x16xf32>
    %44 = arith.mulf %38, %12 : vector<2x16xf32>
    %45 = arith.mulf %37, %39 : vector<2x16xf32>
    %46 = arith.addf %44, %45 : vector<2x16xf32>
    %47 = math.tanh %43 : vector<2x16xf32>
    %48 = arith.mulf %36, %47 : vector<2x16xf32>
    %49 = math.tanh %46 : vector<2x16xf32>
    %50 = arith.mulf %40, %49 : vector<2x16xf32>
    %51 = arith.index_cast %15 : i32 to index
    %c0_18 = arith.constant 0 : index
    %52 = vector.load %arg1[%51, %c0_18] : memref<16x16xf32, #tpu.memory_space<vmem>>, vector<2x16xf32>
    %53 = arith.mulf %52, %48 : vector<2x16xf32>
    %54 = arith.addf %12, %53 : vector<2x16xf32>
    %55 = arith.index_cast %17 : i32 to index
    %c0_19 = arith.constant 0 : index
    %56 = vector.load %arg1[%55, %c0_19] : memref<16x16xf32, #tpu.memory_space<vmem>>, vector<2x16xf32>
    %57 = arith.mulf %56, %50 : vector<2x16xf32>
    %58 = arith.addf %12, %57 : vector<2x16xf32>
    %c1_i32 = arith.constant 1 : i32
    %c7_i32_20 = arith.constant 7 : i32
    %59 = arith.subi %c7_i32_20, %c1_i32 : i32
    %c2_i32_21 = arith.constant 2 : i32
    %60 = arith.muli %c1_i32, %c2_i32_21 : i32
    %61 = tpu.assume_multiple %60, 2 : i32
    %c2_i32_22 = arith.constant 2 : i32
    %62 = arith.muli %59, %c2_i32_22 : i32
    %63 = tpu.assume_multiple %62, 2 : i32
    %64 = arith.index_cast %61 : i32 to index
    %c0_23 = arith.constant 0 : index
    %65 = vector.load %arg13[%64, %c0_23] : memref<16x128xf32, #tpu.memory_space<vmem>>, vector<2x128xf32>
    %66 = arith.index_cast %63 : i32 to index
    %c0_24 = arith.constant 0 : index
    %67 = vector.load %arg13[%66, %c0_24] : memref<16x128xf32, #tpu.memory_space<vmem>>, vector<2x128xf32>
    %68 = arith.select %11, %65, %67 : vector<2x128xi1>, vector<2x128xf32>
    %cst_25 = arith.constant dense<0.000000e+00> : vector<2x128xf32>
    %69 = tpu.matmul %48, %7, %cst_25 {dimension_numbers = #tpu.dot_dimension_numbers<[1], [0], [0], [1], [0, 0, 1, 1], [], []>} : vector<2x16xf32>, vector<16x128xf32>, vector<2x128xf32> -> vector<2x128xf32>
    %70 = arith.addf %68, %69 : vector<2x128xf32>
    %cst_26 = arith.constant dense<0.000000e+00> : vector<2x128xf32>
    %71 = tpu.matmul %50, %8, %cst_26 {dimension_numbers = #tpu.dot_dimension_numbers<[1], [0], [0], [1], [0, 0, 1, 1], [], []>} : vector<2x16xf32>, vector<16x128xf32>, vector<2x128xf32> -> vector<2x128xf32>
    %72 = arith.addf %70, %71 : vector<2x128xf32>
    %73 = arith.negf %72 : vector<2x128xf32>
    %74 = math.exp %73 : vector<2x128xf32>
    %cst_27 = arith.constant 1.000000e+00 : f32
    %75 = vector.broadcast %cst_27 : f32 to vector<2x128xf32>
    %76 = arith.addf %75, %74 : vector<2x128xf32>
    %77 = arith.divf %75, %76 : vector<2x128xf32>
    %78 = math.tanh %72 : vector<2x128xf32>
    %79 = vector.extract_strided_slice %77 {offsets = [0, 0], sizes = [2, 16], strides = [1, 1]} : vector<2x128xf32> to vector<2x16xf32>
    %80 = vector.extract_strided_slice %77 {offsets = [0, 16], sizes = [2, 16], strides = [1, 1]} : vector<2x128xf32> to vector<2x16xf32>
    %81 = vector.extract_strided_slice %78 {offsets = [0, 32], sizes = [2, 16], strides = [1, 1]} : vector<2x128xf32> to vector<2x16xf32>
    %82 = vector.extract_strided_slice %77 {offsets = [0, 48], sizes = [2, 16], strides = [1, 1]} : vector<2x128xf32> to vector<2x16xf32>
    %83 = vector.extract_strided_slice %77 {offsets = [0, 64], sizes = [2, 16], strides = [1, 1]} : vector<2x128xf32> to vector<2x16xf32>
    %84 = vector.extract_strided_slice %77 {offsets = [0, 80], sizes = [2, 16], strides = [1, 1]} : vector<2x128xf32> to vector<2x16xf32>
    %85 = vector.extract_strided_slice %78 {offsets = [0, 96], sizes = [2, 16], strides = [1, 1]} : vector<2x128xf32> to vector<2x16xf32>
    %86 = vector.extract_strided_slice %77 {offsets = [0, 112], sizes = [2, 16], strides = [1, 1]} : vector<2x128xf32> to vector<2x16xf32>
    %87 = arith.mulf %80, %43 : vector<2x16xf32>
    %88 = arith.mulf %79, %81 : vector<2x16xf32>
    %89 = arith.addf %87, %88 : vector<2x16xf32>
    %90 = arith.mulf %84, %46 : vector<2x16xf32>
    %91 = arith.mulf %83, %85 : vector<2x16xf32>
    %92 = arith.addf %90, %91 : vector<2x16xf32>
    %93 = math.tanh %89 : vector<2x16xf32>
    %94 = arith.mulf %82, %93 : vector<2x16xf32>
    %95 = math.tanh %92 : vector<2x16xf32>
    %96 = arith.mulf %86, %95 : vector<2x16xf32>
    %97 = arith.index_cast %61 : i32 to index
    %c0_28 = arith.constant 0 : index
    %98 = vector.load %arg1[%97, %c0_28] : memref<16x16xf32, #tpu.memory_space<vmem>>, vector<2x16xf32>
    %99 = arith.mulf %98, %94 : vector<2x16xf32>
    %100 = arith.addf %54, %99 : vector<2x16xf32>
    %101 = arith.index_cast %63 : i32 to index
    %c0_29 = arith.constant 0 : index
    %102 = vector.load %arg1[%101, %c0_29] : memref<16x16xf32, #tpu.memory_space<vmem>>, vector<2x16xf32>
    %103 = arith.mulf %102, %96 : vector<2x16xf32>
    %104 = arith.addf %58, %103 : vector<2x16xf32>
    %c2_i32_30 = arith.constant 2 : i32
    %c7_i32_31 = arith.constant 7 : i32
    %105 = arith.subi %c7_i32_31, %c2_i32_30 : i32
    %c2_i32_32 = arith.constant 2 : i32
    %106 = arith.muli %c2_i32_30, %c2_i32_32 : i32
    %107 = tpu.assume_multiple %106, 2 : i32
    %c2_i32_33 = arith.constant 2 : i32
    %108 = arith.muli %105, %c2_i32_33 : i32
    %109 = tpu.assume_multiple %108, 2 : i32
    %110 = arith.index_cast %107 : i32 to index
    %c0_34 = arith.constant 0 : index
    %111 = vector.load %arg13[%110, %c0_34] : memref<16x128xf32, #tpu.memory_space<vmem>>, vector<2x128xf32>
    %112 = arith.index_cast %109 : i32 to index
    %c0_35 = arith.constant 0 : index
    %113 = vector.load %arg13[%112, %c0_35] : memref<16x128xf32, #tpu.memory_space<vmem>>, vector<2x128xf32>
    %114 = arith.select %11, %111, %113 : vector<2x128xi1>, vector<2x128xf32>
    %cst_36 = arith.constant dense<0.000000e+00> : vector<2x128xf32>
    %115 = tpu.matmul %94, %7, %cst_36 {dimension_numbers = #tpu.dot_dimension_numbers<[1], [0], [0], [1], [0, 0, 1, 1], [], []>} : vector<2x16xf32>, vector<16x128xf32>, vector<2x128xf32> -> vector<2x128xf32>
    %116 = arith.addf %114, %115 : vector<2x128xf32>
    %cst_37 = arith.constant dense<0.000000e+00> : vector<2x128xf32>
    %117 = tpu.matmul %96, %8, %cst_37 {dimension_numbers = #tpu.dot_dimension_numbers<[1], [0], [0], [1], [0, 0, 1, 1], [], []>} : vector<2x16xf32>, vector<16x128xf32>, vector<2x128xf32> -> vector<2x128xf32>
    %118 = arith.addf %116, %117 : vector<2x128xf32>
    %119 = arith.negf %118 : vector<2x128xf32>
    %120 = math.exp %119 : vector<2x128xf32>
    %cst_38 = arith.constant 1.000000e+00 : f32
    %121 = vector.broadcast %cst_38 : f32 to vector<2x128xf32>
    %122 = arith.addf %121, %120 : vector<2x128xf32>
    %123 = arith.divf %121, %122 : vector<2x128xf32>
    %124 = math.tanh %118 : vector<2x128xf32>
    %125 = vector.extract_strided_slice %123 {offsets = [0, 0], sizes = [2, 16], strides = [1, 1]} : vector<2x128xf32> to vector<2x16xf32>
    %126 = vector.extract_strided_slice %123 {offsets = [0, 16], sizes = [2, 16], strides = [1, 1]} : vector<2x128xf32> to vector<2x16xf32>
    %127 = vector.extract_strided_slice %124 {offsets = [0, 32], sizes = [2, 16], strides = [1, 1]} : vector<2x128xf32> to vector<2x16xf32>
    %128 = vector.extract_strided_slice %123 {offsets = [0, 48], sizes = [2, 16], strides = [1, 1]} : vector<2x128xf32> to vector<2x16xf32>
    %129 = vector.extract_strided_slice %123 {offsets = [0, 64], sizes = [2, 16], strides = [1, 1]} : vector<2x128xf32> to vector<2x16xf32>
    %130 = vector.extract_strided_slice %123 {offsets = [0, 80], sizes = [2, 16], strides = [1, 1]} : vector<2x128xf32> to vector<2x16xf32>
    %131 = vector.extract_strided_slice %124 {offsets = [0, 96], sizes = [2, 16], strides = [1, 1]} : vector<2x128xf32> to vector<2x16xf32>
    %132 = vector.extract_strided_slice %123 {offsets = [0, 112], sizes = [2, 16], strides = [1, 1]} : vector<2x128xf32> to vector<2x16xf32>
    %133 = arith.mulf %126, %89 : vector<2x16xf32>
    %134 = arith.mulf %125, %127 : vector<2x16xf32>
    %135 = arith.addf %133, %134 : vector<2x16xf32>
    %136 = arith.mulf %130, %92 : vector<2x16xf32>
    %137 = arith.mulf %129, %131 : vector<2x16xf32>
    %138 = arith.addf %136, %137 : vector<2x16xf32>
    %139 = math.tanh %135 : vector<2x16xf32>
    %140 = arith.mulf %128, %139 : vector<2x16xf32>
    %141 = math.tanh %138 : vector<2x16xf32>
    %142 = arith.mulf %132, %141 : vector<2x16xf32>
    %143 = arith.index_cast %107 : i32 to index
    %c0_39 = arith.constant 0 : index
    %144 = vector.load %arg1[%143, %c0_39] : memref<16x16xf32, #tpu.memory_space<vmem>>, vector<2x16xf32>
    %145 = arith.mulf %144, %140 : vector<2x16xf32>
    %146 = arith.addf %100, %145 : vector<2x16xf32>
    %147 = arith.index_cast %109 : i32 to index
    %c0_40 = arith.constant 0 : index
    %148 = vector.load %arg1[%147, %c0_40] : memref<16x16xf32, #tpu.memory_space<vmem>>, vector<2x16xf32>
    %149 = arith.mulf %148, %142 : vector<2x16xf32>
    %150 = arith.addf %104, %149 : vector<2x16xf32>
    %c3_i32 = arith.constant 3 : i32
    %c7_i32_41 = arith.constant 7 : i32
    %151 = arith.subi %c7_i32_41, %c3_i32 : i32
    %c2_i32_42 = arith.constant 2 : i32
    %152 = arith.muli %c3_i32, %c2_i32_42 : i32
    %153 = tpu.assume_multiple %152, 2 : i32
    %c2_i32_43 = arith.constant 2 : i32
    %154 = arith.muli %151, %c2_i32_43 : i32
    %155 = tpu.assume_multiple %154, 2 : i32
    %156 = arith.index_cast %153 : i32 to index
    %c0_44 = arith.constant 0 : index
    %157 = vector.load %arg13[%156, %c0_44] : memref<16x128xf32, #tpu.memory_space<vmem>>, vector<2x128xf32>
    %158 = arith.index_cast %155 : i32 to index
    %c0_45 = arith.constant 0 : index
    %159 = vector.load %arg13[%158, %c0_45] : memref<16x128xf32, #tpu.memory_space<vmem>>, vector<2x128xf32>
    %160 = arith.select %11, %157, %159 : vector<2x128xi1>, vector<2x128xf32>
    %cst_46 = arith.constant dense<0.000000e+00> : vector<2x128xf32>
    %161 = tpu.matmul %140, %7, %cst_46 {dimension_numbers = #tpu.dot_dimension_numbers<[1], [0], [0], [1], [0, 0, 1, 1], [], []>} : vector<2x16xf32>, vector<16x128xf32>, vector<2x128xf32> -> vector<2x128xf32>
    %162 = arith.addf %160, %161 : vector<2x128xf32>
    %cst_47 = arith.constant dense<0.000000e+00> : vector<2x128xf32>
    %163 = tpu.matmul %142, %8, %cst_47 {dimension_numbers = #tpu.dot_dimension_numbers<[1], [0], [0], [1], [0, 0, 1, 1], [], []>} : vector<2x16xf32>, vector<16x128xf32>, vector<2x128xf32> -> vector<2x128xf32>
    %164 = arith.addf %162, %163 : vector<2x128xf32>
    %165 = arith.negf %164 : vector<2x128xf32>
    %166 = math.exp %165 : vector<2x128xf32>
    %cst_48 = arith.constant 1.000000e+00 : f32
    %167 = vector.broadcast %cst_48 : f32 to vector<2x128xf32>
    %168 = arith.addf %167, %166 : vector<2x128xf32>
    %169 = arith.divf %167, %168 : vector<2x128xf32>
    %170 = math.tanh %164 : vector<2x128xf32>
    %171 = vector.extract_strided_slice %169 {offsets = [0, 0], sizes = [2, 16], strides = [1, 1]} : vector<2x128xf32> to vector<2x16xf32>
    %172 = vector.extract_strided_slice %169 {offsets = [0, 16], sizes = [2, 16], strides = [1, 1]} : vector<2x128xf32> to vector<2x16xf32>
    %173 = vector.extract_strided_slice %170 {offsets = [0, 32], sizes = [2, 16], strides = [1, 1]} : vector<2x128xf32> to vector<2x16xf32>
    %174 = vector.extract_strided_slice %169 {offsets = [0, 48], sizes = [2, 16], strides = [1, 1]} : vector<2x128xf32> to vector<2x16xf32>
    %175 = vector.extract_strided_slice %169 {offsets = [0, 64], sizes = [2, 16], strides = [1, 1]} : vector<2x128xf32> to vector<2x16xf32>
    %176 = vector.extract_strided_slice %169 {offsets = [0, 80], sizes = [2, 16], strides = [1, 1]} : vector<2x128xf32> to vector<2x16xf32>
    %177 = vector.extract_strided_slice %170 {offsets = [0, 96], sizes = [2, 16], strides = [1, 1]} : vector<2x128xf32> to vector<2x16xf32>
    %178 = vector.extract_strided_slice %169 {offsets = [0, 112], sizes = [2, 16], strides = [1, 1]} : vector<2x128xf32> to vector<2x16xf32>
    %179 = arith.mulf %172, %135 : vector<2x16xf32>
    %180 = arith.mulf %171, %173 : vector<2x16xf32>
    %181 = arith.addf %179, %180 : vector<2x16xf32>
    %182 = arith.mulf %176, %138 : vector<2x16xf32>
    %183 = arith.mulf %175, %177 : vector<2x16xf32>
    %184 = arith.addf %182, %183 : vector<2x16xf32>
    %185 = math.tanh %181 : vector<2x16xf32>
    %186 = arith.mulf %174, %185 : vector<2x16xf32>
    %187 = math.tanh %184 : vector<2x16xf32>
    %188 = arith.mulf %178, %187 : vector<2x16xf32>
    %189 = arith.index_cast %153 : i32 to index
    %c0_49 = arith.constant 0 : index
    %190 = vector.load %arg1[%189, %c0_49] : memref<16x16xf32, #tpu.memory_space<vmem>>, vector<2x16xf32>
    %191 = arith.mulf %190, %186 : vector<2x16xf32>
    %192 = arith.addf %146, %191 : vector<2x16xf32>
    %193 = arith.index_cast %155 : i32 to index
    %c0_50 = arith.constant 0 : index
    %194 = vector.load %arg1[%193, %c0_50] : memref<16x16xf32, #tpu.memory_space<vmem>>, vector<2x16xf32>
    %195 = arith.mulf %194, %188 : vector<2x16xf32>
    %196 = arith.addf %150, %195 : vector<2x16xf32>
    %c4_i32 = arith.constant 4 : i32
    %c7_i32_51 = arith.constant 7 : i32
    %197 = arith.subi %c7_i32_51, %c4_i32 : i32
    %c2_i32_52 = arith.constant 2 : i32
    %198 = arith.muli %c4_i32, %c2_i32_52 : i32
    %199 = tpu.assume_multiple %198, 2 : i32
    %c2_i32_53 = arith.constant 2 : i32
    %200 = arith.muli %197, %c2_i32_53 : i32
    %201 = tpu.assume_multiple %200, 2 : i32
    %202 = arith.index_cast %199 : i32 to index
    %c0_54 = arith.constant 0 : index
    %203 = vector.load %arg13[%202, %c0_54] : memref<16x128xf32, #tpu.memory_space<vmem>>, vector<2x128xf32>
    %204 = arith.index_cast %201 : i32 to index
    %c0_55 = arith.constant 0 : index
    %205 = vector.load %arg13[%204, %c0_55] : memref<16x128xf32, #tpu.memory_space<vmem>>, vector<2x128xf32>
    %206 = arith.select %11, %203, %205 : vector<2x128xi1>, vector<2x128xf32>
    %cst_56 = arith.constant dense<0.000000e+00> : vector<2x128xf32>
    %207 = tpu.matmul %186, %7, %cst_56 {dimension_numbers = #tpu.dot_dimension_numbers<[1], [0], [0], [1], [0, 0, 1, 1], [], []>} : vector<2x16xf32>, vector<16x128xf32>, vector<2x128xf32> -> vector<2x128xf32>
    %208 = arith.addf %206, %207 : vector<2x128xf32>
    %cst_57 = arith.constant dense<0.000000e+00> : vector<2x128xf32>
    %209 = tpu.matmul %188, %8, %cst_57 {dimension_numbers = #tpu.dot_dimension_numbers<[1], [0], [0], [1], [0, 0, 1, 1], [], []>} : vector<2x16xf32>, vector<16x128xf32>, vector<2x128xf32> -> vector<2x128xf32>
    %210 = arith.addf %208, %209 : vector<2x128xf32>
    %211 = arith.negf %210 : vector<2x128xf32>
    %212 = math.exp %211 : vector<2x128xf32>
    %cst_58 = arith.constant 1.000000e+00 : f32
    %213 = vector.broadcast %cst_58 : f32 to vector<2x128xf32>
    %214 = arith.addf %213, %212 : vector<2x128xf32>
    %215 = arith.divf %213, %214 : vector<2x128xf32>
    %216 = math.tanh %210 : vector<2x128xf32>
    %217 = vector.extract_strided_slice %215 {offsets = [0, 0], sizes = [2, 16], strides = [1, 1]} : vector<2x128xf32> to vector<2x16xf32>
    %218 = vector.extract_strided_slice %215 {offsets = [0, 16], sizes = [2, 16], strides = [1, 1]} : vector<2x128xf32> to vector<2x16xf32>
    %219 = vector.extract_strided_slice %216 {offsets = [0, 32], sizes = [2, 16], strides = [1, 1]} : vector<2x128xf32> to vector<2x16xf32>
    %220 = vector.extract_strided_slice %215 {offsets = [0, 48], sizes = [2, 16], strides = [1, 1]} : vector<2x128xf32> to vector<2x16xf32>
    %221 = vector.extract_strided_slice %215 {offsets = [0, 64], sizes = [2, 16], strides = [1, 1]} : vector<2x128xf32> to vector<2x16xf32>
    %222 = vector.extract_strided_slice %215 {offsets = [0, 80], sizes = [2, 16], strides = [1, 1]} : vector<2x128xf32> to vector<2x16xf32>
    %223 = vector.extract_strided_slice %216 {offsets = [0, 96], sizes = [2, 16], strides = [1, 1]} : vector<2x128xf32> to vector<2x16xf32>
    %224 = vector.extract_strided_slice %215 {offsets = [0, 112], sizes = [2, 16], strides = [1, 1]} : vector<2x128xf32> to vector<2x16xf32>
    %225 = arith.mulf %218, %181 : vector<2x16xf32>
    %226 = arith.mulf %217, %219 : vector<2x16xf32>
    %227 = arith.addf %225, %226 : vector<2x16xf32>
    %228 = arith.mulf %222, %184 : vector<2x16xf32>
    %229 = arith.mulf %221, %223 : vector<2x16xf32>
    %230 = arith.addf %228, %229 : vector<2x16xf32>
    %231 = math.tanh %227 : vector<2x16xf32>
    %232 = arith.mulf %220, %231 : vector<2x16xf32>
    %233 = math.tanh %230 : vector<2x16xf32>
    %234 = arith.mulf %224, %233 : vector<2x16xf32>
    %235 = arith.index_cast %199 : i32 to index
    %c0_59 = arith.constant 0 : index
    %236 = vector.load %arg1[%235, %c0_59] : memref<16x16xf32, #tpu.memory_space<vmem>>, vector<2x16xf32>
    %237 = arith.mulf %236, %232 : vector<2x16xf32>
    %238 = arith.addf %192, %237 : vector<2x16xf32>
    %239 = arith.index_cast %201 : i32 to index
    %c0_60 = arith.constant 0 : index
    %240 = vector.load %arg1[%239, %c0_60] : memref<16x16xf32, #tpu.memory_space<vmem>>, vector<2x16xf32>
    %241 = arith.mulf %240, %234 : vector<2x16xf32>
    %242 = arith.addf %196, %241 : vector<2x16xf32>
    %c5_i32 = arith.constant 5 : i32
    %c7_i32_61 = arith.constant 7 : i32
    %243 = arith.subi %c7_i32_61, %c5_i32 : i32
    %c2_i32_62 = arith.constant 2 : i32
    %244 = arith.muli %c5_i32, %c2_i32_62 : i32
    %245 = tpu.assume_multiple %244, 2 : i32
    %c2_i32_63 = arith.constant 2 : i32
    %246 = arith.muli %243, %c2_i32_63 : i32
    %247 = tpu.assume_multiple %246, 2 : i32
    %248 = arith.index_cast %245 : i32 to index
    %c0_64 = arith.constant 0 : index
    %249 = vector.load %arg13[%248, %c0_64] : memref<16x128xf32, #tpu.memory_space<vmem>>, vector<2x128xf32>
    %250 = arith.index_cast %247 : i32 to index
    %c0_65 = arith.constant 0 : index
    %251 = vector.load %arg13[%250, %c0_65] : memref<16x128xf32, #tpu.memory_space<vmem>>, vector<2x128xf32>
    %252 = arith.select %11, %249, %251 : vector<2x128xi1>, vector<2x128xf32>
    %cst_66 = arith.constant dense<0.000000e+00> : vector<2x128xf32>
    %253 = tpu.matmul %232, %7, %cst_66 {dimension_numbers = #tpu.dot_dimension_numbers<[1], [0], [0], [1], [0, 0, 1, 1], [], []>} : vector<2x16xf32>, vector<16x128xf32>, vector<2x128xf32> -> vector<2x128xf32>
    %254 = arith.addf %252, %253 : vector<2x128xf32>
    %cst_67 = arith.constant dense<0.000000e+00> : vector<2x128xf32>
    %255 = tpu.matmul %234, %8, %cst_67 {dimension_numbers = #tpu.dot_dimension_numbers<[1], [0], [0], [1], [0, 0, 1, 1], [], []>} : vector<2x16xf32>, vector<16x128xf32>, vector<2x128xf32> -> vector<2x128xf32>
    %256 = arith.addf %254, %255 : vector<2x128xf32>
    %257 = arith.negf %256 : vector<2x128xf32>
    %258 = math.exp %257 : vector<2x128xf32>
    %cst_68 = arith.constant 1.000000e+00 : f32
    %259 = vector.broadcast %cst_68 : f32 to vector<2x128xf32>
    %260 = arith.addf %259, %258 : vector<2x128xf32>
    %261 = arith.divf %259, %260 : vector<2x128xf32>
    %262 = math.tanh %256 : vector<2x128xf32>
    %263 = vector.extract_strided_slice %261 {offsets = [0, 0], sizes = [2, 16], strides = [1, 1]} : vector<2x128xf32> to vector<2x16xf32>
    %264 = vector.extract_strided_slice %261 {offsets = [0, 16], sizes = [2, 16], strides = [1, 1]} : vector<2x128xf32> to vector<2x16xf32>
    %265 = vector.extract_strided_slice %262 {offsets = [0, 32], sizes = [2, 16], strides = [1, 1]} : vector<2x128xf32> to vector<2x16xf32>
    %266 = vector.extract_strided_slice %261 {offsets = [0, 48], sizes = [2, 16], strides = [1, 1]} : vector<2x128xf32> to vector<2x16xf32>
    %267 = vector.extract_strided_slice %261 {offsets = [0, 64], sizes = [2, 16], strides = [1, 1]} : vector<2x128xf32> to vector<2x16xf32>
    %268 = vector.extract_strided_slice %261 {offsets = [0, 80], sizes = [2, 16], strides = [1, 1]} : vector<2x128xf32> to vector<2x16xf32>
    %269 = vector.extract_strided_slice %262 {offsets = [0, 96], sizes = [2, 16], strides = [1, 1]} : vector<2x128xf32> to vector<2x16xf32>
    %270 = vector.extract_strided_slice %261 {offsets = [0, 112], sizes = [2, 16], strides = [1, 1]} : vector<2x128xf32> to vector<2x16xf32>
    %271 = arith.mulf %264, %227 : vector<2x16xf32>
    %272 = arith.mulf %263, %265 : vector<2x16xf32>
    %273 = arith.addf %271, %272 : vector<2x16xf32>
    %274 = arith.mulf %268, %230 : vector<2x16xf32>
    %275 = arith.mulf %267, %269 : vector<2x16xf32>
    %276 = arith.addf %274, %275 : vector<2x16xf32>
    %277 = math.tanh %273 : vector<2x16xf32>
    %278 = arith.mulf %266, %277 : vector<2x16xf32>
    %279 = math.tanh %276 : vector<2x16xf32>
    %280 = arith.mulf %270, %279 : vector<2x16xf32>
    %281 = arith.index_cast %245 : i32 to index
    %c0_69 = arith.constant 0 : index
    %282 = vector.load %arg1[%281, %c0_69] : memref<16x16xf32, #tpu.memory_space<vmem>>, vector<2x16xf32>
    %283 = arith.mulf %282, %278 : vector<2x16xf32>
    %284 = arith.addf %238, %283 : vector<2x16xf32>
    %285 = arith.index_cast %247 : i32 to index
    %c0_70 = arith.constant 0 : index
    %286 = vector.load %arg1[%285, %c0_70] : memref<16x16xf32, #tpu.memory_space<vmem>>, vector<2x16xf32>
    %287 = arith.mulf %286, %280 : vector<2x16xf32>
    %288 = arith.addf %242, %287 : vector<2x16xf32>
    %c6_i32 = arith.constant 6 : i32
    %c7_i32_71 = arith.constant 7 : i32
    %289 = arith.subi %c7_i32_71, %c6_i32 : i32
    %c2_i32_72 = arith.constant 2 : i32
    %290 = arith.muli %c6_i32, %c2_i32_72 : i32
    %291 = tpu.assume_multiple %290, 2 : i32
    %c2_i32_73 = arith.constant 2 : i32
    %292 = arith.muli %289, %c2_i32_73 : i32
    %293 = tpu.assume_multiple %292, 2 : i32
    %294 = arith.index_cast %291 : i32 to index
    %c0_74 = arith.constant 0 : index
    %295 = vector.load %arg13[%294, %c0_74] : memref<16x128xf32, #tpu.memory_space<vmem>>, vector<2x128xf32>
    %296 = arith.index_cast %293 : i32 to index
    %c0_75 = arith.constant 0 : index
    %297 = vector.load %arg13[%296, %c0_75] : memref<16x128xf32, #tpu.memory_space<vmem>>, vector<2x128xf32>
    %298 = arith.select %11, %295, %297 : vector<2x128xi1>, vector<2x128xf32>
    %cst_76 = arith.constant dense<0.000000e+00> : vector<2x128xf32>
    %299 = tpu.matmul %278, %7, %cst_76 {dimension_numbers = #tpu.dot_dimension_numbers<[1], [0], [0], [1], [0, 0, 1, 1], [], []>} : vector<2x16xf32>, vector<16x128xf32>, vector<2x128xf32> -> vector<2x128xf32>
    %300 = arith.addf %298, %299 : vector<2x128xf32>
    %cst_77 = arith.constant dense<0.000000e+00> : vector<2x128xf32>
    %301 = tpu.matmul %280, %8, %cst_77 {dimension_numbers = #tpu.dot_dimension_numbers<[1], [0], [0], [1], [0, 0, 1, 1], [], []>} : vector<2x16xf32>, vector<16x128xf32>, vector<2x128xf32> -> vector<2x128xf32>
    %302 = arith.addf %300, %301 : vector<2x128xf32>
    %303 = arith.negf %302 : vector<2x128xf32>
    %304 = math.exp %303 : vector<2x128xf32>
    %cst_78 = arith.constant 1.000000e+00 : f32
    %305 = vector.broadcast %cst_78 : f32 to vector<2x128xf32>
    %306 = arith.addf %305, %304 : vector<2x128xf32>
    %307 = arith.divf %305, %306 : vector<2x128xf32>
    %308 = math.tanh %302 : vector<2x128xf32>
    %309 = vector.extract_strided_slice %307 {offsets = [0, 0], sizes = [2, 16], strides = [1, 1]} : vector<2x128xf32> to vector<2x16xf32>
    %310 = vector.extract_strided_slice %307 {offsets = [0, 16], sizes = [2, 16], strides = [1, 1]} : vector<2x128xf32> to vector<2x16xf32>
    %311 = vector.extract_strided_slice %308 {offsets = [0, 32], sizes = [2, 16], strides = [1, 1]} : vector<2x128xf32> to vector<2x16xf32>
    %312 = vector.extract_strided_slice %307 {offsets = [0, 48], sizes = [2, 16], strides = [1, 1]} : vector<2x128xf32> to vector<2x16xf32>
    %313 = vector.extract_strided_slice %307 {offsets = [0, 64], sizes = [2, 16], strides = [1, 1]} : vector<2x128xf32> to vector<2x16xf32>
    %314 = vector.extract_strided_slice %307 {offsets = [0, 80], sizes = [2, 16], strides = [1, 1]} : vector<2x128xf32> to vector<2x16xf32>
    %315 = vector.extract_strided_slice %308 {offsets = [0, 96], sizes = [2, 16], strides = [1, 1]} : vector<2x128xf32> to vector<2x16xf32>
    %316 = vector.extract_strided_slice %307 {offsets = [0, 112], sizes = [2, 16], strides = [1, 1]} : vector<2x128xf32> to vector<2x16xf32>
    %317 = arith.mulf %310, %273 : vector<2x16xf32>
    %318 = arith.mulf %309, %311 : vector<2x16xf32>
    %319 = arith.addf %317, %318 : vector<2x16xf32>
    %320 = arith.mulf %314, %276 : vector<2x16xf32>
    %321 = arith.mulf %313, %315 : vector<2x16xf32>
    %322 = arith.addf %320, %321 : vector<2x16xf32>
    %323 = math.tanh %319 : vector<2x16xf32>
    %324 = arith.mulf %312, %323 : vector<2x16xf32>
    %325 = math.tanh %322 : vector<2x16xf32>
    %326 = arith.mulf %316, %325 : vector<2x16xf32>
    %327 = arith.index_cast %291 : i32 to index
    %c0_79 = arith.constant 0 : index
    %328 = vector.load %arg1[%327, %c0_79] : memref<16x16xf32, #tpu.memory_space<vmem>>, vector<2x16xf32>
    %329 = arith.mulf %328, %324 : vector<2x16xf32>
    %330 = arith.addf %284, %329 : vector<2x16xf32>
    %331 = arith.index_cast %293 : i32 to index
    %c0_80 = arith.constant 0 : index
    %332 = vector.load %arg1[%331, %c0_80] : memref<16x16xf32, #tpu.memory_space<vmem>>, vector<2x16xf32>
    %333 = arith.mulf %332, %326 : vector<2x16xf32>
    %334 = arith.addf %288, %333 : vector<2x16xf32>
    %c7_i32_81 = arith.constant 7 : i32
    %c7_i32_82 = arith.constant 7 : i32
    %335 = arith.subi %c7_i32_82, %c7_i32_81 : i32
    %c2_i32_83 = arith.constant 2 : i32
    %336 = arith.muli %c7_i32_81, %c2_i32_83 : i32
    %337 = tpu.assume_multiple %336, 2 : i32
    %c2_i32_84 = arith.constant 2 : i32
    %338 = arith.muli %335, %c2_i32_84 : i32
    %339 = tpu.assume_multiple %338, 2 : i32
    %340 = arith.index_cast %337 : i32 to index
    %c0_85 = arith.constant 0 : index
    %341 = vector.load %arg13[%340, %c0_85] : memref<16x128xf32, #tpu.memory_space<vmem>>, vector<2x128xf32>
    %342 = arith.index_cast %339 : i32 to index
    %c0_86 = arith.constant 0 : index
    %343 = vector.load %arg13[%342, %c0_86] : memref<16x128xf32, #tpu.memory_space<vmem>>, vector<2x128xf32>
    %344 = arith.select %11, %341, %343 : vector<2x128xi1>, vector<2x128xf32>
    %cst_87 = arith.constant dense<0.000000e+00> : vector<2x128xf32>
    %345 = tpu.matmul %324, %7, %cst_87 {dimension_numbers = #tpu.dot_dimension_numbers<[1], [0], [0], [1], [0, 0, 1, 1], [], []>} : vector<2x16xf32>, vector<16x128xf32>, vector<2x128xf32> -> vector<2x128xf32>
    %346 = arith.addf %344, %345 : vector<2x128xf32>
    %cst_88 = arith.constant dense<0.000000e+00> : vector<2x128xf32>
    %347 = tpu.matmul %326, %8, %cst_88 {dimension_numbers = #tpu.dot_dimension_numbers<[1], [0], [0], [1], [0, 0, 1, 1], [], []>} : vector<2x16xf32>, vector<16x128xf32>, vector<2x128xf32> -> vector<2x128xf32>
    %348 = arith.addf %346, %347 : vector<2x128xf32>
    %349 = arith.negf %348 : vector<2x128xf32>
    %350 = math.exp %349 : vector<2x128xf32>
    %cst_89 = arith.constant 1.000000e+00 : f32
    %351 = vector.broadcast %cst_89 : f32 to vector<2x128xf32>
    %352 = arith.addf %351, %350 : vector<2x128xf32>
    %353 = arith.divf %351, %352 : vector<2x128xf32>
    %354 = math.tanh %348 : vector<2x128xf32>
    %355 = vector.extract_strided_slice %353 {offsets = [0, 0], sizes = [2, 16], strides = [1, 1]} : vector<2x128xf32> to vector<2x16xf32>
    %356 = vector.extract_strided_slice %353 {offsets = [0, 16], sizes = [2, 16], strides = [1, 1]} : vector<2x128xf32> to vector<2x16xf32>
    %357 = vector.extract_strided_slice %354 {offsets = [0, 32], sizes = [2, 16], strides = [1, 1]} : vector<2x128xf32> to vector<2x16xf32>
    %358 = vector.extract_strided_slice %353 {offsets = [0, 48], sizes = [2, 16], strides = [1, 1]} : vector<2x128xf32> to vector<2x16xf32>
    %359 = vector.extract_strided_slice %353 {offsets = [0, 64], sizes = [2, 16], strides = [1, 1]} : vector<2x128xf32> to vector<2x16xf32>
    %360 = vector.extract_strided_slice %353 {offsets = [0, 80], sizes = [2, 16], strides = [1, 1]} : vector<2x128xf32> to vector<2x16xf32>
    %361 = vector.extract_strided_slice %354 {offsets = [0, 96], sizes = [2, 16], strides = [1, 1]} : vector<2x128xf32> to vector<2x16xf32>
    %362 = vector.extract_strided_slice %353 {offsets = [0, 112], sizes = [2, 16], strides = [1, 1]} : vector<2x128xf32> to vector<2x16xf32>
    %363 = arith.mulf %356, %319 : vector<2x16xf32>
    %364 = arith.mulf %355, %357 : vector<2x16xf32>
    %365 = arith.addf %363, %364 : vector<2x16xf32>
    %366 = arith.mulf %360, %322 : vector<2x16xf32>
    %367 = arith.mulf %359, %361 : vector<2x16xf32>
    %368 = arith.addf %366, %367 : vector<2x16xf32>
    %369 = math.tanh %365 : vector<2x16xf32>
    %370 = arith.mulf %358, %369 : vector<2x16xf32>
    %371 = math.tanh %368 : vector<2x16xf32>
    %372 = arith.mulf %362, %371 : vector<2x16xf32>
    %373 = arith.index_cast %337 : i32 to index
    %c0_90 = arith.constant 0 : index
    %374 = vector.load %arg1[%373, %c0_90] : memref<16x16xf32, #tpu.memory_space<vmem>>, vector<2x16xf32>
    %375 = arith.mulf %374, %370 : vector<2x16xf32>
    %376 = arith.addf %330, %375 : vector<2x16xf32>
    %377 = arith.index_cast %339 : i32 to index
    %c0_91 = arith.constant 0 : index
    %378 = vector.load %arg1[%377, %c0_91] : memref<16x16xf32, #tpu.memory_space<vmem>>, vector<2x16xf32>
    %379 = arith.mulf %378, %372 : vector<2x16xf32>
    %380 = arith.addf %334, %379 : vector<2x16xf32>
    %c8_i32 = arith.constant 8 : i32
    %c0_92 = arith.constant 0 : index
    %c0_93 = arith.constant 0 : index
    %381 = vector.load %arg6[%c0_92, %c0_93] : memref<16x7xf32, #tpu.memory_space<vmem>>, vector<16x7xf32>
    %cst_94 = arith.constant dense<0.000000e+00> : vector<2x7xf32>
    %382 = tpu.matmul %376, %381, %cst_94 {dimension_numbers = #tpu.dot_dimension_numbers<[1], [0], [0], [1], [0, 0, 1, 1], [], []>} : vector<2x16xf32>, vector<16x7xf32>, vector<2x7xf32> -> vector<2x7xf32>
    %c0_95 = arith.constant 0 : index
    %c0_96 = arith.constant 0 : index
    %383 = vector.load %arg7[%c0_95, %c0_96] : memref<1x7xf32, #tpu.memory_space<vmem>>, vector<1x7xf32>
    %384 = vector.broadcast %383 : vector<1x7xf32> to vector<2x7xf32>
    %385 = arith.addf %382, %384 : vector<2x7xf32>
    %c0_97 = arith.constant 0 : index
    %c0_98 = arith.constant 0 : index
    %386 = vector.load %arg8[%c0_97, %c0_98] : memref<16x3xf32, #tpu.memory_space<vmem>>, vector<16x3xf32>
    %cst_99 = arith.constant dense<0.000000e+00> : vector<2x3xf32>
    %387 = tpu.matmul %380, %386, %cst_99 {dimension_numbers = #tpu.dot_dimension_numbers<[1], [0], [0], [1], [0, 0, 1, 1], [], []>} : vector<2x16xf32>, vector<16x3xf32>, vector<2x3xf32> -> vector<2x3xf32>
    %c0_100 = arith.constant 0 : index
    %c0_101 = arith.constant 0 : index
    %388 = vector.load %arg9[%c0_100, %c0_101] : memref<1x3xf32, #tpu.memory_space<vmem>>, vector<1x3xf32>
    %389 = vector.broadcast %388 : vector<1x3xf32> to vector<2x3xf32>
    %390 = arith.addf %387, %389 : vector<2x3xf32>
    %391 = vector.extract_strided_slice %385 {offsets = [0, 0], sizes = [2, 4], strides = [1, 1]} : vector<2x7xf32> to vector<2x4xf32>
    %cst_102 = arith.constant dense<0xFF800000> : vector<2xf32>
    %392 = vector.multi_reduction <maximumf>, %391, %cst_102 [1] : vector<2x4xf32> to vector<2xf32>
    %393 = vector.shape_cast %392 : vector<2xf32> to vector<2x1xf32>
    %394 = vector.broadcast %393 : vector<2x1xf32> to vector<2x4xf32>
    %395 = arith.subf %391, %394 : vector<2x4xf32>
    %396 = math.exp %395 : vector<2x4xf32>
    %cst_103 = arith.constant dense<0.000000e+00> : vector<2xf32>
    %397 = vector.multi_reduction <add>, %396, %cst_103 [1] : vector<2x4xf32> to vector<2xf32>
    %398 = vector.shape_cast %397 : vector<2xf32> to vector<2x1xf32>
    %399 = tpu.reciprocal %398 {approx = true} : vector<2x1xf32> -> vector<2x1xf32>
    %400 = vector.broadcast %399 : vector<2x1xf32> to vector<2x4xf32>
    %401 = arith.mulf %396, %400 : vector<2x4xf32>
    %402 = vector.extract_strided_slice %385 {offsets = [0, 4], sizes = [2, 3], strides = [1, 1]} : vector<2x7xf32> to vector<2x3xf32>
    %cst_104 = arith.constant dense<0xFF800000> : vector<2xf32>
    %403 = vector.multi_reduction <maximumf>, %402, %cst_104 [1] : vector<2x3xf32> to vector<2xf32>
    %404 = vector.shape_cast %403 : vector<2xf32> to vector<2x1xf32>
    %405 = vector.broadcast %404 : vector<2x1xf32> to vector<2x3xf32>
    %406 = arith.subf %402, %405 : vector<2x3xf32>
    %407 = math.exp %406 : vector<2x3xf32>
    %cst_105 = arith.constant dense<0.000000e+00> : vector<2xf32>
    %408 = vector.multi_reduction <add>, %407, %cst_105 [1] : vector<2x3xf32> to vector<2xf32>
    %409 = vector.shape_cast %408 : vector<2xf32> to vector<2x1xf32>
    %410 = tpu.reciprocal %409 {approx = true} : vector<2x1xf32> -> vector<2x1xf32>
    %411 = vector.broadcast %410 : vector<2x1xf32> to vector<2x3xf32>
    %412 = arith.mulf %407, %411 : vector<2x3xf32>
    %cst_106 = arith.constant dense<0xFF800000> : vector<2xf32>
    %413 = vector.multi_reduction <maximumf>, %390, %cst_106 [1] : vector<2x3xf32> to vector<2xf32>
    %414 = vector.shape_cast %413 : vector<2xf32> to vector<2x1xf32>
    %415 = vector.broadcast %414 : vector<2x1xf32> to vector<2x3xf32>
    %416 = arith.subf %390, %415 : vector<2x3xf32>
    %417 = math.exp %416 : vector<2x3xf32>
    %cst_107 = arith.constant dense<0.000000e+00> : vector<2xf32>
    %418 = vector.multi_reduction <add>, %417, %cst_107 [1] : vector<2x3xf32> to vector<2xf32>
    %419 = vector.shape_cast %418 : vector<2xf32> to vector<2x1xf32>
    %420 = tpu.reciprocal %419 {approx = true} : vector<2x1xf32> -> vector<2x1xf32>
    %421 = vector.broadcast %420 : vector<2x1xf32> to vector<2x3xf32>
    %422 = arith.mulf %417, %421 : vector<2x3xf32>
    %c0_108 = arith.constant 0 : index
    %c0_109 = arith.constant 0 : index
    %423 = vector.load %arg10[%c0_108, %c0_109] : memref<4x16xf32, #tpu.memory_space<vmem>>, vector<4x16xf32>
    %cst_110 = arith.constant dense<0.000000e+00> : vector<2x16xf32>
    %424 = tpu.matmul %401, %423, %cst_110 {dimension_numbers = #tpu.dot_dimension_numbers<[1], [0], [0], [1], [0, 0, 1, 1], [], []>} : vector<2x4xf32>, vector<4x16xf32>, vector<2x16xf32> -> vector<2x16xf32>
    %c0_111 = arith.constant 0 : index
    %c0_112 = arith.constant 0 : index
    %425 = vector.load %arg11[%c0_111, %c0_112] : memref<3x16xf32, #tpu.memory_space<vmem>>, vector<3x16xf32>
    %cst_113 = arith.constant dense<0.000000e+00> : vector<2x16xf32>
    %426 = tpu.matmul %422, %425, %cst_113 {dimension_numbers = #tpu.dot_dimension_numbers<[1], [0], [0], [1], [0, 0, 1, 1], [], []>} : vector<2x3xf32>, vector<3x16xf32>, vector<2x16xf32> -> vector<2x16xf32>
    %cst_114 = arith.constant 0.000000e+00 : f32
    %427 = vector.broadcast %cst_114 : f32 to vector<2x128xf32>
    %c0_115 = arith.constant 0 : index
    %c0_116 = arith.constant 0 : index
    %428 = vector.load %arg12[%c0_115, %c0_116] : memref<2x128xf32, #tpu.memory_space<vmem>>, vector<2x128xf32>
    tpu.vector_store %arg12[%c0_115, %c0_116], %427 {strides = array<i32>} : memref<2x128xf32, #tpu.memory_space<vmem>>, vector<2x128xf32>,
    %c0_117 = arith.constant 0 : index
    %c0_118 = arith.constant 0 : index
    %429 = vector.load %arg12[%c0_117, %c0_118] : memref<2x128xf32, #tpu.memory_space<vmem>>, vector<2x16xf32>
    tpu.vector_store %arg12[%c0_117, %c0_118], %376 {strides = array<i32>} : memref<2x128xf32, #tpu.memory_space<vmem>>, vector<2x16xf32>,
    %c0_119 = arith.constant 0 : index
    %c16 = arith.constant 16 : index
    %430 = vector.load %arg12[%c0_119, %c16] : memref<2x128xf32, #tpu.memory_space<vmem>>, vector<2x16xf32>
    tpu.vector_store %arg12[%c0_119, %c16], %380 {strides = array<i32>} : memref<2x128xf32, #tpu.memory_space<vmem>>, vector<2x16xf32>,
    %c0_120 = arith.constant 0 : index
    %c32 = arith.constant 32 : index
    %431 = vector.load %arg12[%c0_120, %c32] : memref<2x128xf32, #tpu.memory_space<vmem>>, vector<2x16xf32>
    tpu.vector_store %arg12[%c0_120, %c32], %424 {strides = array<i32>} : memref<2x128xf32, #tpu.memory_space<vmem>>, vector<2x16xf32>,
    %c0_121 = arith.constant 0 : index
    %c48 = arith.constant 48 : index
    %432 = vector.load %arg12[%c0_121, %c48] : memref<2x128xf32, #tpu.memory_space<vmem>>, vector<2x16xf32>
    tpu.vector_store %arg12[%c0_121, %c48], %426 {strides = array<i32>} : memref<2x128xf32, #tpu.memory_space<vmem>>, vector<2x16xf32>,
    %c0_122 = arith.constant 0 : index
    %c64 = arith.constant 64 : index
    %433 = vector.load %arg12[%c0_122, %c64] : memref<2x128xf32, #tpu.memory_space<vmem>>, vector<2x3xf32>
    tpu.vector_store %arg12[%c0_122, %c64], %422 {strides = array<i32>} : memref<2x128xf32, #tpu.memory_space<vmem>>, vector<2x3xf32>,
    %c0_123 = arith.constant 0 : index
    %c80 = arith.constant 80 : index
    %434 = vector.load %arg12[%c0_123, %c80] : memref<2x128xf32, #tpu.memory_space<vmem>>, vector<2x3xf32>
    tpu.vector_store %arg12[%c0_123, %c80], %412 {strides = array<i32>} : memref<2x128xf32, #tpu.memory_space<vmem>>, vector<2x3xf32>,
    return
  }
}

</mosaic_0001>

<bundles_post_ra>
// kernel: tpu_custom_call.1
= control target key start
LH: loop header
LB: loop body
LE: loop exit
PB: predicated region body
PF: predicated region fallthrough
CT: control target
= control target key end

     0   :  { %17 = vsyncpa [#allocation4], 0  ;;  %s3041_s0 = inlined_call_operand.vmem [shape: f32[16,32], index: 0, kind: input, shape index: {}]   ;;  %s3042_s1 = inlined_call_operand.hbm [shape: f32[16,16], index: 1, kind: input, shape index: {}]   ;;  %s3043_s2 = inlined_call_operand.vmem [shape: f32[32,128], index: 2, kind: input, shape index: {}]   ;;  %s3044_s3 = inlined_call_operand.vmem [shape: f32[1,128], index: 3, kind: input, shape index: {}]   ;;  %s3045_s4 = inlined_call_operand.hbm [shape: f32[16,128], index: 4, kind: input, shape index: {}]   ;;  %s3046_s5 = inlined_call_operand.hbm [shape: f32[16,128], index: 5, kind: input, shape index: {}]   ;;  %s3047_s6 = inlined_call_operand.vmem [shape: f32[16,7], index: 6, kind: input, shape index: {}]   ;;  %s3048_s7 = inlined_call_operand.vmem [shape: f32[1,7], index: 7, kind: input, shape index: {}]   ;;  %s3049_s8 = inlined_call_operand.vmem [shape: f32[16,3], index: 8, kind: input, shape index: {}]   ;;  %s3050_s9 = inlined_call_operand.vmem [shape: f32[1,3], index: 9, kind: input, shape index: {}]   ;;  %s3051_s10 = inlined_call_operand.vmem [shape: f32[4,16], index: 10, kind: input, shape index: {}]   ;;  %s3052_s11 = inlined_call_operand.vmem [shape: f32[3,16], index: 11, kind: input, shape index: {}]   ;;  %s3053_s12 = inlined_call_operand.hbm [shape: f32[2,128], index: 12, kind: output, shape index: {}]  }
   0x1   :  { %18 = vsyncpa [#allocation7], 0 }
   0x2   :  { %19 = vsyncpa [#allocation5], 0  ;;  %s2599_s21 = smov [#allocation6]   ;;  %s2600_s23 = smov [#allocation3]  }
   0x3   :  { %s43_s22 = sshll.u32 %s2599_s21, 4  ;;  %s27_s24 = sshll.u32 %s2600_s23, 4  ;;  %s44_s22 = int_to_ptr.vmem [resolvable:$true] %s43_s22  ;;  %s2681_s24 = int_to_ptr.vmem [resolvable:$true] %s27_s24 }
   0x4   :  { %s2505_s27 = scalar_lea.hbm %s3045_s4, 256 }
   0x5   :  { %p2506_p0 = scmp.ne.s32.totalorder %s3045_s4, %s2505_s27  ;;  %p2509_p1 = scmp.lt.u32.totalorder %s2505_s27, %s3045_s4 }
   0x7   :  { %p2511_p2 = pnand %p2509_p1, %p2506_p0 }
   0x9   :  { %2514 = shalt.err (!%p2511_p2)
}
   0xa   :  { %s2515_s14 = scalar_lea.vmem %s44_s22, 256  ;;  %p2520_p4 = scmp.lt.s32.totalorder %s44_s22, %s44_s22 }
   0xb   :  { %p2516_p3 = scmp.ne.s32.totalorder %s44_s22, %s2515_s14  ;;  %p2521_p5 = scmp.lt.s32.totalorder %s2515_s14, %s2515_s14 }
   0xd   :  { %p2522_p6 = por %p2521_p5, %p2520_p4 }
   0xf   :  { %p2523_p7 = pnand %p2522_p6, %p2516_p3 }
  0x11   :  { %2526 = shalt.err (!%p2523_p7)
}
  0x12   :  { %s2601_s15 = smov 128   ;;  %s2602_s16 = smov 8  }
  0x13   :  { %49 = dma.hbm_to_vmem [thread:$0]  %s3045_s4, 256, %s44_s22, [#allocation7], %s2601_s15, %s2601_s15, %s2602_s16  }
  0x14   :  { %s2527_s21 = scalar_lea.hbm %s3042_s1, 256 }
  0x15   :  { %p2528_p8 = scmp.ne.s32.totalorder %s3042_s1, %s2527_s21  ;;  %p2531_p9 = scmp.lt.u32.totalorder %s2527_s21, %s3042_s1 }
  0x17   :  { %p2533_p10 = pnand %p2531_p9, %p2528_p8 }
  0x19   :  { %2536 = shalt.err (!%p2533_p10)
}
  0x1a   :  { %s2537_s28 = scalar_lea.vmem %s2681_s24, 256  ;;  %p2542_p12 = scmp.lt.s32.totalorder %s2681_s24, %s2681_s24 }
  0x1b   :  { %p2538_p11 = scmp.ne.s32.totalorder %s2681_s24, %s2537_s28  ;;  %p2543_p13 = scmp.lt.s32.totalorder %s2537_s28, %s2537_s28 }
  0x1d   :  { %p2544_p0 = por %p2543_p13, %p2542_p12 }
  0x1f   :  { %p2545_p1 = pnand %p2544_p0, %p2538_p11 }
  0x21   :  { %2548 = shalt.err (!%p2545_p1)
}
  0x22   :  { %33 = dma.hbm_to_vmem [thread:$0]  %s3042_s1, 256, %s2681_s24, [#allocation4], %s2601_s15, %s2601_s15, %s2602_s16  }
  0x23   :  { %s2603_s29 = smov [#allocation8]   ;;  %s2549_s17 = scalar_lea.hbm %s3046_s5, 256 }
  0x24   :  { %s55_s30 = sshll.u32 %s2603_s29, 4  ;;  %p2550_p2 = scmp.ne.s32.totalorder %s3046_s5, %s2549_s17  ;;  %s56_s30 = int_to_ptr.vmem [resolvable:$true] %s55_s30 }
  0x25   :  { %p2553_p3 = scmp.lt.u32.totalorder %s2549_s17, %s3046_s5 }
  0x27   :  { %p2555_p4 = pnand %p2553_p3, %p2550_p2 }
  0x29   :  { %2558 = shalt.err (!%p2555_p4)
}
  0x2a   :  { %s2559_s23 = scalar_lea.vmem %s56_s30, 256  ;;  %p2564_p6 = scmp.lt.s32.totalorder %s56_s30, %s56_s30 }
  0x2b   :  { %p2560_p5 = scmp.ne.s32.totalorder %s56_s30, %s2559_s23  ;;  %p2565_p7 = scmp.lt.s32.totalorder %s2559_s23, %s2559_s23 }
  0x2d   :  { %p2566_p8 = por %p2565_p7, %p2564_p6 }
  0x2f   :  { %p2567_p9 = pnand %p2566_p8, %p2560_p5 }
  0x31   :  { %2570 = shalt.err (!%p2567_p9)
}
  0x32   :  { %61 = dma.hbm_to_vmem [thread:$0]  %s3046_s5, 256, %s56_s30, [#allocation7], %s2601_s15, %s2601_s15, %s2602_s16  }
  0x33   :  { %2593 = dma.done.wait [#allocation4], 256  }
  0x34   :  { %2594 = vsyncadd [#allocation4], 4294967040 }
  0x35   :  { %2595 = dma.done.wait [#allocation7], 512  }
  0x36   :  { %2596 = vsyncadd [#allocation7], 4294966784  ;;  %v2604_v0 = vmov 0.0|0.0   ;;  %vm2605_vm0 = vmmov 0   ;;  %v2606_v1 = vmov 0.0   ;;  %v85_v2 = vld [vmem:[%s3043_s2] sm:$0xff]  ;;  %v184_v20 = vlaneseq }
  0x37   :  { %2334 = vmatprep.subr.bf16.mxu1 %v2604_v0  ;;  %2194 = vmatprep.mubr.msk.f32.mxu1 %vm2605_vm0, %v2606_v1  ;;  %2035 = vst [vmem:[#allocation9] sm:$0x3] %v2606_v1  ;;  %v86_v3 = vld [vmem:[%s3043_s2 + $0x8] sm:$0xff]  ;;  %v180_v4 = vld [vmem:[#allocation6] sm:$0xff]  ;;  %vm96_vm1 = vcmask 261120   ;;  %v87_v7 = vld [vmem:[%s3043_s2 + $0x10] sm:$0xff] }
  0x38   :  { %v2326_v5 = vpack.c.bf16 %v86_v3, %v85_v2  ;;  %v181_v6 = vld [vmem:[#allocation6 + $0x8] sm:$0xff]  ;;  %v88_v8 = vld [vmem:[%s3043_s2 + $0x18] sm:$0xff]  ;;  %v83_v11 = vld [vmem:[%s3041_s0] sm:$0xff]  ;;  %v2781_v23 = vand.u32 127, %v184_v20  ;;  %s2608_s14 = smov 16   ;;  %s2609_s17 = smov 32  }
  0x39   :  { %v2749_v9 = vpack.c.bf16 %v181_v6, %v180_v4  ;;  %v2330_v10 = vpack.c.bf16 %v88_v8, %v87_v7  ;;  %v182_v12 = vld [vmem:[#allocation8] sm:$0xff]  ;;  %2187 = vmatprep.mubr.msk.f32.mxu0 %vm96_vm1, %v83_v11  ;;  %v183_v13 = vld [vmem:[#allocation8 + $0x8] sm:$0xff]  ;;  %v84_v15 = vld [vmem:[%s3041_s0 + $0x8] sm:$0xff]  ;;  %s2610_s18 = smov 80   ;;  %vm191_vm3 = vcmask 130048   ;;  %vm2036_vm4 = vcmask 123904  }
  0x3a   :  { %2327 = vmatprep.subr.bf16.mxu0 %v2326_v5  ;;  %v2756_v14 = vpack.c.bf16 %v183_v13, %v182_v12  ;;  %v2082_v16 = vld [vmem:[%s3044_s3] ss:$0 sm:$0xff]  ;;  %vm186_vm2 = vcmp.lt.s32.totalorder %v2781_v23, 64  ;;  %s2607_s3 = smov 96   ;;  %vm1837_vm5 = vcmask 25600   ;;  %vm1860_vm6 = vcmask 17408  }
  0x3b   :  { %2336 = vmatpush3.bf16.msra.mxu1 %v2749_v9  ;;  %2329 = vmatpush3.bf16.msra.mxu0 %v2326_v5  ;;  %vm1849_vm7 = vcmask 50208   ;;  %vm1882_vm8 = vcmask 1043456   ;;  %vm1961_vm9 = vcmask 1042432   ;;  %vm1878_vm10 = vcmask 31744   ;;  %s2614_s4 = smov 76   ;;  %s2615_s22 = smov [#allocation9]  }
  0x3c   :  { %2331 = vmatprep.subr.bf16.mxu0 %v2330_v10  ;;  %2337 = vmatprep.subr.bf16.mxu1 %v2604_v0  ;;  %vm1957_vm11 = vcmask 23552   ;;  %vm2041_vm12 = vcmask 255104   ;;  %vm2047_vm13 = vcmask 386304   ;;  %vm2053_vm14 = vcmask 517504   ;;  %s2072_s29 = sshll.u32 %s2615_s22, 4  ;;  %s2073_s29 = int_to_ptr.vmem [resolvable:$true] %s2072_s29 }
  0x3d   :  { %vm2058_vm15 = vcmask 542208   ;;  %s2571_s2 = scalar_lea.vmem %s2073_s29, 32  ;;  %p2576_p11 = scmp.lt.s32.totalorder %s2073_s29, %s2073_s29 }
  0x3e   :  { %2195 = vmatmul.mubr.f32.vlgmr.msra.gmra.mrb[0].mxu1 %v2606_v1  ;;  %p2572_p10 = scmp.ne.s32.totalorder %s2073_s29, %s2571_s2  ;;  %p2577_p12 = scmp.lt.s32.totalorder %s2571_s2, %s2571_s2 }
  0x3f   :  { %2333 = vmatpush3.bf16.msra.mxu0 %v2330_v10  ;;  %2339 = vmatpush3.bf16.msra.mxu1 %v2756_v14 }
  0x40   :  { %2201 = vmatprep.mubr.msk.f32.mxu1 %vm2605_vm0, %v2606_v1  ;;  %2340 = vmatprep.subr.bf16.mxu0 %v2604_v0  ;;  %p2578_p13 = por %p2577_p12, %p2576_p11 }
  0x41   :  { %2346 = vmatprep.subr.bf16.mxu1 %v2604_v0 }
  0x42   :  { %2188 = vmatmul.mubr.msk.f32.vlgmr.msra.gmra.mrb[0].mxu0 %vm96_vm1, %v84_v15  ;;  %p2579_p0 = pnand %p2578_p13, %p2572_p10 }
  0x43   :  { %2342 = vmatpush3.bf16.msra.mxu0 %v2749_v9  ;;  %2208 = vmatprep.mubr.msk.f32.mxu0 %vm2605_vm0, %v2606_v1 }
  0x44   :  { %2343 = vmatprep.subr.bf16.mxu0 %v2604_v0 }
  0x46   :  { %2202 = vmatmul.mubr.f32.vlgmr.msra.gmra.mrb[0].mxu1 %v2606_v1 }
  0x47   :  { %2348 = vmatpush3.bf16.msra.mxu1 %v2749_v9  ;;  %2222 = vmatprep.mubr.msk.f32.mxu1 %vm2605_vm0, %v2606_v1 }
  0x48   :  { %2349 = vmatprep.subr.bf16.mxu1 %v2604_v0 }
 0x115   :  { %v2189_v17 = vpop.f32.mrb[0].mxu0 }
 0x116   :  { %v175_v18 = vadd.f32 %v2189_v17, %v2082_v16  ;;  %v169_v19 = vpop.f32.mrb[1].mxu0 }
 0x117   :  { %v170_v21 = vadd.f32 %v2082_v16, %v169_v19 }
 0x118   :  { %179 = vst [vmem:[#allocation2 + $0x8] sm:$0xff] %v175_v18 }
 0x119   :  { %178 = vst [vmem:[#allocation2] sm:$0xff] %v170_v21  ;;  %v332_v22 = vpop.f32.mrb[0].mxu1 }
 0x11a   :  { %v2203_v24 = vpop.f32.mrb[1].mxu1 }
 0x11f   :  { %v189_v25 = vld [vmem:[#allocation2 + $0xe] sm:$0x3]  ;;  %v378_v26 = vld [vmem:[#allocation2 + $0xc] sm:$0x3]  ;;  %v2784_v27 = vld [vmem:[#allocation2 + $0xa] sm:$0x3] }
 0x120   :  { %v187_v28 = vld [vmem:[#allocation2] sm:$0x3]  ;;  %v376_v29 = vld [vmem:[#allocation2 + $0x2] sm:$0x3]  ;;  %v2786_v30 = vld [vmem:[#allocation2 + $0x4] sm:$0x3] }
 0x121   :  { %v190_v31 = vsel %vm186_vm2, %v187_v28, %v189_v25  ;;  %v2790_v32 = vld [vmem:[#allocation2 + $0x6] sm:$0x3]  ;;  %v2792_v33 = vld [vmem:[#allocation2 + $0x8] sm:$0x3]  ;;  %v2798_v34 = vsel %vm186_vm2, %v2784_v27, %v2786_v30  ;;  %v2808_v37 = vsel %vm186_vm2, %v378_v26, %v376_v29  ;;  %v2812_v38 = vsel %vm186_vm2, %v189_v25, %v187_v28 }
 0x122   :  { %v2388_v35 = vadd.f32 %v332_v22, %v190_v31  ;;  %v2804_v36 = vsel %vm186_vm2, %v2792_v33, %v2790_v32  ;;  %v379_v54 = vsel %vm186_vm2, %v376_v29, %v378_v26  ;;  %v569_v12 = vsel %vm186_vm2, %v2786_v30, %v2784_v27 }
 0x124   :  { %2429 = vtanh.f32 %v2388_v35  ;;  %v2085_v40 = vmul.f32 -1.442695, %v2388_v35 }
 0x126   :  { %2431 = vpow2.f32 %v2085_v40 }
 0x12e   :  { %v2430_v39 = vpop.eup %2429 }
 0x12f   :  { %346 = vrot.lane.b32.xlu0 %v2430_v39, %s2607_s3  ;;  %v759_v39 = vsel %vm186_vm2, %v2790_v32, %v2792_v33 }
 0x130   :  { %v2432_v41 = vpop.eup %2431 }
 0x131   :  { %v340_v42 = vadd.f32 1.0, %v2432_v41 }
 0x133   :  { %2433 = vrcp.f32 %v340_v42 }
 0x13d   :  { %v2434_v43 = vpop.eup %2433 }
 0x13e   :  { %v344_v46 = vmul.f32 0.0, %v2434_v43 }
 0x1a1   :  { %v347_v44 = vpop.permute.xlu0 %346 }
 0x1a2   :  { %v349_v45 = vmul.f32 %v2434_v43, %v347_v44 }
 0x1a4   :  { %351 = vrot.lane.b32.xlu0 %v349_v45, %s2608_s14 }
 0x216   :  { %v352_v47 = vpop.permute.xlu0 %351 }
 0x217   :  { %v354_v48 = vadd.f32 %v352_v47, %v344_v46 }
 0x219   :  { %2435 = vtanh.f32 %v354_v48 }
 0x223   :  { %v2436_v49 = vpop.eup %2435 }
 0x224   :  { %357 = vrot.lane.b32.xlu1 %v2436_v49, %s2609_s17 }
 0x296   :  { %v358_v50 = vpop.permute.xlu1 %357 }
 0x297   :  { %v360_v51 = vmul.f32 %v2434_v43, %v358_v50 }
 0x299   :  { %370 = vrot.lane.b32.xlu0 %v360_v51, %s2608_s14  ;;  %363 = vrot.lane.b32.xlu1 %v360_v51, %s2610_s18 }
 0x30b   :  { %v2819_v52 = vpop.permute.xlu1 %363  ;;  %v2827_v53 = vpop.permute.xlu0 %370 }
 0x30c   :  { %2209 = vmatmul.mubr.msk.f32.vlgmr.msra.gmra.mrb[2].mxu0 %vm191_vm3, %v2819_v52 }
 0x30d   :  { %2345 = vmatpush3.bf16.msra.mxu0 %v2756_v14  ;;  %2215 = vmatprep.mubr.msk.f32.mxu0 %vm2605_vm0, %v2606_v1 }
 0x30e   :  { %2352 = vmatprep.subr.bf16.mxu0 %v2604_v0 }
 0x314   :  { %2216 = vmatmul.mubr.msk.f32.vlgmr.msra.gmra.mrb[2].mxu0 %vm191_vm3, %v2827_v53 }
 0x315   :  { %2354 = vmatpush3.bf16.msra.mxu0 %v2749_v9  ;;  %2236 = vmatprep.mubr.msk.f32.mxu0 %vm2605_vm0, %v2606_v1 }
 0x316   :  { %2355 = vmatprep.subr.bf16.mxu0 %v2604_v0 }
 0x3e7   :  { %v521_v55 = vpop.f32.mrb[2].mxu0 }
 0x3e8   :  { %v2389_v56 = vadd.f32 %v521_v55, %v379_v54  ;;  %v2217_v57 = vpop.f32.mrb[3].mxu0 }
 0x3ea   :  { %2437 = vtanh.f32 %v2389_v56  ;;  %v2088_v59 = vmul.f32 -1.442695, %v2389_v56 }
 0x3ec   :  { %2439 = vpow2.f32 %v2088_v59 }
 0x3f4   :  { %v2438_v58 = vpop.eup %2437 }
 0x3f5   :  { %535 = vrot.lane.b32.xlu1 %v2438_v58, %s2607_s3 }
 0x3f6   :  { %v2440_v60 = vpop.eup %2439 }
 0x3f7   :  { %v529_v61 = vadd.f32 1.0, %v2440_v60 }
 0x3f9   :  { %2441 = vrcp.f32 %v529_v61 }
 0x403   :  { %v2442_v62 = vpop.eup %2441 }
 0x404   :  { %v533_v3 = vmul.f32 %v2442_v62, %v354_v48 }
 0x467   :  { %v536_v63 = vpop.permute.xlu1 %535 }
 0x468   :  { %v538_v2 = vmul.f32 %v2442_v62, %v536_v63 }
 0x46a   :  { %540 = vrot.lane.b32.xlu0 %v538_v2, %s2608_s14 }
 0x4dc   :  { %v541_v4 = vpop.permute.xlu0 %540 }
 0x4dd   :  { %v543_v5 = vadd.f32 %v541_v4, %v533_v3 }
 0x4df   :  { %2443 = vtanh.f32 %v543_v5 }
 0x4e9   :  { %v2444_v6 = vpop.eup %2443 }
 0x4ea   :  { %546 = vrot.lane.b32.xlu1 %v2444_v6, %s2609_s17 }
 0x55c   :  { %v547_v7 = vpop.permute.xlu1 %546 }
 0x55d   :  { %v549_v8 = vmul.f32 %v2442_v62, %v547_v7 }
 0x55f   :  { %560 = vrot.lane.b32.xlu1 %v549_v8, %s2608_s14  ;;  %553 = vrot.lane.b32.xlu0 %v549_v8, %s2610_s18 }
 0x5d1   :  { %v2842_v10 = vpop.permute.xlu0 %553  ;;  %v2850_v11 = vpop.permute.xlu1 %560 }
 0x5d2   :  { %2223 = vmatmul.mubr.msk.f32.vlgmr.msra.gmra.mrb[2].mxu1 %vm191_vm3, %v2842_v10 }
 0x5d3   :  { %2351 = vmatpush3.bf16.msra.mxu1 %v2756_v14  ;;  %2229 = vmatprep.mubr.msk.f32.mxu1 %vm2605_vm0, %v2606_v1 }
 0x5d4   :  { %2358 = vmatprep.subr.bf16.mxu1 %v2604_v0 }
 0x5da   :  { %2230 = vmatmul.mubr.msk.f32.vlgmr.msra.gmra.mrb[2].mxu1 %vm191_vm3, %v2850_v11 }
 0x5db   :  { %2360 = vmatpush3.bf16.msra.mxu1 %v2749_v9  ;;  %2250 = vmatprep.mubr.msk.f32.mxu1 %vm2605_vm0, %v2606_v1 }
 0x5dc   :  { %2361 = vmatprep.subr.bf16.mxu1 %v2604_v0 }
 0x6ad   :  { %v711_v13 = vpop.f32.mrb[2].mxu1 }
 0x6ae   :  { %v2390_v15 = vadd.f32 %v711_v13, %v569_v12  ;;  %v2231_v16 = vpop.f32.mrb[3].mxu1 }
 0x6b0   :  { %2445 = vtanh.f32 %v2390_v15  ;;  %v2091_v18 = vmul.f32 -1.442695, %v2390_v15 }
 0x6b2   :  { %2447 = vpow2.f32 %v2091_v18 }
 0x6ba   :  { %v2446_v17 = vpop.eup %2445 }
 0x6bb   :  { %725 = vrot.lane.b32.xlu0 %v2446_v17, %s2607_s3 }
 0x6bc   :  { %v2448_v19 = vpop.eup %2447 }
 0x6bd   :  { %v719_v20 = vadd.f32 1.0, %v2448_v19 }
 0x6bf   :  { %2449 = vrcp.f32 %v719_v20 }
 0x6c9   :  { %v2450_v21 = vpop.eup %2449 }
 0x6ca   :  { %v723_v25 = vmul.f32 %v2450_v21, %v543_v5 }
 0x72d   :  { %v726_v22 = vpop.permute.xlu0 %725 }
 0x72e   :  { %v728_v24 = vmul.f32 %v2450_v21, %v726_v22 }
 0x730   :  { %730 = vrot.lane.b32.xlu1 %v728_v24, %s2608_s14 }
 0x7a2   :  { %v731_v26 = vpop.permute.xlu1 %730 }
 0x7a3   :  { %v733_v27 = vadd.f32 %v731_v26, %v723_v25 }
 0x7a5   :  { %2451 = vtanh.f32 %v733_v27 }
 0x7af   :  { %v2452_v28 = vpop.eup %2451 }
 0x7b0   :  { %736 = vrot.lane.b32.xlu0 %v2452_v28, %s2609_s17 }
 0x822   :  { %v737_v29 = vpop.permute.xlu0 %736 }
 0x823   :  { %v739_v30 = vmul.f32 %v2450_v21, %v737_v29 }
 0x825   :  { %750 = vrot.lane.b32.xlu0 %v739_v30, %s2608_s14  ;;  %743 = vrot.lane.b32.xlu1 %v739_v30, %s2610_s18 }
 0x897   :  { %v2867_v31 = vpop.permute.xlu1 %743  ;;  %v2875_v35 = vpop.permute.xlu0 %750 }
 0x898   :  { %2237 = vmatmul.mubr.msk.f32.vlgmr.msra.gmra.mrb[4].mxu0 %vm191_vm3, %v2867_v31 }
 0x899   :  { %2357 = vmatpush3.bf16.msra.mxu0 %v2756_v14  ;;  %2243 = vmatprep.mubr.msk.f32.mxu0 %vm2605_vm0, %v2606_v1 }
 0x89a   :  { %2364 = vmatprep.subr.bf16.mxu0 %v2604_v0 }
 0x8a0   :  { %2244 = vmatmul.mubr.msk.f32.vlgmr.msra.gmra.mrb[4].mxu0 %vm191_vm3, %v2875_v35 }
 0x8a1   :  { %2366 = vmatpush3.bf16.msra.mxu0 %v2749_v9  ;;  %2264 = vmatprep.mubr.msk.f32.mxu0 %vm2605_vm0, %v2606_v1 }
 0x8a2   :  { %2367 = vmatprep.subr.bf16.mxu0 %v2604_v0 }
 0x973   :  { %v901_v40 = vpop.f32.mrb[4].mxu0 }
 0x974   :  { %v2391_v41 = vadd.f32 %v901_v40, %v759_v39  ;;  %v2245_v42 = vpop.f32.mrb[5].mxu0 }
 0x976   :  { %2453 = vtanh.f32 %v2391_v41  ;;  %v2094_v44 = vmul.f32 -1.442695, %v2391_v41 }
 0x978   :  { %2455 = vpow2.f32 %v2094_v44 }
 0x980   :  { %v2454_v43 = vpop.eup %2453 }
 0x981   :  { %915 = vrot.lane.b32.xlu1 %v2454_v43, %s2607_s3 }
 0x982   :  { %v2456_v45 = vpop.eup %2455 }
 0x983   :  { %v909_v46 = vadd.f32 1.0, %v2456_v45 }
 0x985   :  { %2457 = vrcp.f32 %v909_v46 }
 0x98f   :  { %v2458_v47 = vpop.eup %2457 }
 0x990   :  { %v913_v50 = vmul.f32 %v2458_v47, %v733_v27 }
 0x9f3   :  { %v916_v48 = vpop.permute.xlu1 %915 }
 0x9f4   :  { %v918_v49 = vmul.f32 %v2458_v47, %v916_v48 }
 0x9f6   :  { %920 = vrot.lane.b32.xlu0 %v918_v49, %s2608_s14 }
 0xa68   :  { %v921_v23 = vpop.permute.xlu0 %920 }
 0xa69   :  { %v923_v32 = vadd.f32 %v921_v23, %v913_v50 }
 0xa6b   :  { %2459 = vtanh.f32 %v923_v32 }
 0xa75   :  { %v2460_v33 = vpop.eup %2459 }
 0xa76   :  { %926 = vrot.lane.b32.xlu1 %v2460_v33, %s2609_s17 }
 0xae8   :  { %v927_v51 = vpop.permute.xlu1 %926 }
 0xae9   :  { %v929_v54 = vmul.f32 %v2458_v47, %v927_v51 }
 0xaeb   :  { %940 = vrot.lane.b32.xlu1 %v929_v54, %s2608_s14  ;;  %933 = vrot.lane.b32.xlu0 %v929_v54, %s2610_s18 }
 0xb5d   :  { %v2892_v55 = vpop.permute.xlu0 %933  ;;  %v2900_v56 = vpop.permute.xlu1 %940 }
 0xb5e   :  { %2251 = vmatmul.mubr.msk.f32.vlgmr.msra.gmra.mrb[4].mxu1 %vm191_vm3, %v2892_v55 }
 0xb5f   :  { %2363 = vmatpush3.bf16.msra.mxu1 %v2756_v14  ;;  %2257 = vmatprep.mubr.msk.f32.mxu1 %vm2605_vm0, %v2606_v1 }
 0xb60   :  { %2370 = vmatprep.subr.bf16.mxu1 %v2604_v0 }
 0xb66   :  { %2258 = vmatmul.mubr.msk.f32.vlgmr.msra.gmra.mrb[4].mxu1 %vm191_vm3, %v2900_v56 }
 0xb67   :  { %2372 = vmatpush3.bf16.msra.mxu1 %v2749_v9  ;;  %2278 = vmatprep.mubr.msk.f32.mxu1 %vm2605_vm0, %v2606_v1 }
 0xb68   :  { %2373 = vmatprep.subr.bf16.mxu1 %v2604_v0 }
 0xc39   :  { %v1087_v57 = vpop.f32.mrb[4].mxu1 }
 0xc3a   :  { %v2392_v58 = vadd.f32 %v1087_v57, %v2804_v36  ;;  %v2259_v59 = vpop.f32.mrb[5].mxu1 }
 0xc3c   :  { %2461 = vtanh.f32 %v2392_v58  ;;  %v2097_v61 = vmul.f32 -1.442695, %v2392_v58 }
 0xc3e   :  { %2463 = vpow2.f32 %v2097_v61 }
 0xc46   :  { %v2462_v60 = vpop.eup %2461 }
 0xc47   :  { %1101 = vrot.lane.b32.xlu0 %v2462_v60, %s2607_s3 }
 0xc48   :  { %v2464_v62 = vpop.eup %2463 }
 0xc49   :  { %v1095_v63 = vadd.f32 1.0, %v2464_v62 }
 0xc4b   :  { %2465 = vrcp.f32 %v1095_v63 }
 0xc55   :  { %v2466_v2 = vpop.eup %2465 }
 0xc56   :  { %v1099_v5 = vmul.f32 %v2466_v2, %v923_v32 }
 0xcb9   :  { %v1102_v3 = vpop.permute.xlu0 %1101 }
 0xcba   :  { %v1104_v4 = vmul.f32 %v2466_v2, %v1102_v3 }
 0xcbc   :  { %1106 = vrot.lane.b32.xlu1 %v1104_v4, %s2608_s14 }
 0xd2e   :  { %v1107_v6 = vpop.permute.xlu1 %1106 }
 0xd2f   :  { %v1109_v7 = vadd.f32 %v1107_v6, %v1099_v5 }
 0xd31   :  { %2467 = vtanh.f32 %v1109_v7 }
 0xd3b   :  { %v2468_v36 = vpop.eup %2467 }
 0xd3c   :  { %1112 = vrot.lane.b32.xlu0 %v2468_v36, %s2609_s17 }
 0xdae   :  { %v1113_v8 = vpop.permute.xlu0 %1112 }
 0xdaf   :  { %v1115_v12 = vmul.f32 %v2466_v2, %v1113_v8  ;;  %v1673_v8 = vld [vmem:[%s3047_s6] sm:$0xff] }
 0xdb1   :  { %1122 = vrot.lane.b32.xlu0 %v1115_v12, %s2608_s14  ;;  %1117 = vrot.lane.b32.xlu1 %v1115_v12, %s2610_s18  ;;  %v1674_v12 = vld [vmem:[%s3047_s6 + $0x8] sm:$0xff] }
 0xe23   :  { %v2914_v13 = vpop.permute.xlu1 %1117  ;;  %v2922_v15 = vpop.permute.xlu0 %1122 }
 0xe24   :  { %2265 = vmatmul.mubr.msk.f32.vlgmr.msra.gmra.mrb[6].mxu0 %vm191_vm3, %v2914_v13 }
 0xe25   :  { %2369 = vmatpush3.bf16.msra.mxu0 %v2756_v14  ;;  %2271 = vmatprep.mubr.msk.f32.mxu0 %vm2605_vm0, %v2606_v1 }
 0xe26   :  { %2376 = vmatprep.subr.bf16.mxu0 %v2604_v0 }
 0xe2c   :  { %2272 = vmatmul.mubr.msk.f32.vlgmr.msra.gmra.mrb[6].mxu0 %vm191_vm3, %v2922_v15 }
 0xe2d   :  { %2378 = vmatpush3.bf16.msra.mxu0 %v2749_v9  ;;  %2292 = vmatprep.mubr.msk.f32.mxu0 %vm2605_vm0, %v2606_v1 }
 0xe2e   :  { %2379 = vmatprep.subr.bf16.mxu0 %v2604_v0 }
 0xeff   :  { %v1269_v16 = vpop.f32.mrb[6].mxu0 }
 0xf00   :  { %v2393_v17 = vadd.f32 %v1269_v16, %v2798_v34  ;;  %v2273_v18 = vpop.f32.mrb[7].mxu0  ;;  %v2383_v16 = vpack.c.bf16 %v1674_v12, %v1673_v8 }
 0xf02   :  { %2469 = vtanh.f32 %v2393_v17  ;;  %v2100_v20 = vmul.f32 -1.442695, %v2393_v17 }
 0xf04   :  { %2471 = vpow2.f32 %v2100_v20  ;;  %v741_v20 = vld [vmem:[#allocation3 + $0x4] sm:$0x3] }
 0xf0c   :  { %v2470_v19 = vpop.eup %2469 }
 0xf0d   :  { %1283 = vrot.lane.b32.xlu1 %v2470_v19, %s2607_s3  ;;  %v551_v19 = vld [vmem:[#allocation3 + $0x2] sm:$0x3] }
 0xf0e   :  { %v2472_v21 = vpop.eup %2471 }
 0xf0f   :  { %v1277_v22 = vadd.f32 1.0, %v2472_v21  ;;  %v361_v21 = vld [vmem:[#allocation3] sm:$0x3] }
 0xf11   :  { %2473 = vrcp.f32 %v1277_v22  ;;  %v556_v22 = vmul.f32 %v2842_v10, %v551_v19 }
 0xf1b   :  { %v2474_v24 = vpop.eup %2473 }
 0xf1c   :  { %v1281_v26 = vmul.f32 %v2474_v24, %v1109_v7 }
 0xf7f   :  { %v1284_v9 = vpop.permute.xlu1 %1283 }
 0xf80   :  { %v1286_v25 = vmul.f32 %v2474_v24, %v1284_v9  ;;  %v931_v9 = vld [vmem:[#allocation3 + $0x6] sm:$0x3] }
 0xf82   :  { %1288 = vrot.lane.b32.xlu0 %v1286_v25, %s2608_s14  ;;  %v746_v25 = vmul.f32 %v2867_v31, %v741_v20 }
 0xff4   :  { %v1289_v27 = vpop.permute.xlu0 %1288 }
 0xff5   :  { %v1291_v28 = vadd.f32 %v1289_v27, %v1281_v26  ;;  %v366_v26 = vmul.f32 %v2819_v52, %v361_v21  ;;  %v749_v27 = vld [vmem:[#allocation3 + $0xa] sm:$0x3] }
 0xff7   :  { %2475 = vtanh.f32 %v1291_v28 }
0x1001   :  { %v2476_v34 = vpop.eup %2475 }
0x1002   :  { %1294 = vrot.lane.b32.xlu1 %v2476_v34, %s2609_s17  ;;  %v936_v34 = vmul.f32 %v2892_v55, %v931_v9 }
0x1074   :  { %v1295_v29 = vpop.permute.xlu1 %1294 }
0x1075   :  { %v1297_v30 = vmul.f32 %v2474_v24, %v1295_v29  ;;  %v559_v24 = vld [vmem:[#allocation3 + $0xc] sm:$0x3]  ;;  %v557_v29 = vadd.f32 %v556_v22, %v366_v26 }
0x1077   :  { %1304 = vrot.lane.b32.xlu1 %v1297_v30, %s2608_s14  ;;  %1299 = vrot.lane.b32.xlu0 %v1297_v30, %s2610_s18  ;;  %v939_v30 = vld [vmem:[#allocation3 + $0x8] sm:$0x3] }
0x10e9   :  { %v2936_v39 = vpop.permute.xlu0 %1299  ;;  %v2944_v40 = vpop.permute.xlu1 %1304 }
0x10ea   :  { %2279 = vmatmul.mubr.msk.f32.vlgmr.msra.gmra.mrb[6].mxu1 %vm191_vm3, %v2936_v39  ;;  %v1302_v31 = vmul.f32 %v2936_v39, %v749_v27 }
0x10eb   :  { %2375 = vmatpush3.bf16.msra.mxu1 %v2756_v14  ;;  %2285 = vmatprep.mubr.msk.f32.mxu1 %vm2605_vm0, %v2606_v1 }
0x10ec   :  { %2382 = vmatprep.subr.bf16.mxu1 %v2604_v0 }
0x10f2   :  { %2286 = vmatmul.mubr.msk.f32.vlgmr.msra.gmra.mrb[6].mxu1 %vm191_vm3, %v2944_v40 }
0x10f3   :  { %2306 = vmatprep.mubr.msk.f32.mxu1 %vm2605_vm0, %v2606_v1  ;;  %2384 = vmatpush3.bf16.msra.mxu1 %v2383_v16 }
0x10f4   :  { %2385 = vmatprep.subr.bf16.mxu1 %v2604_v0  ;;  %v563_v0 = vmul.f32 %v2850_v11, %v559_v24 }
0x11c5   :  { %v1451_v41 = vpop.f32.mrb[6].mxu1 }
0x11c6   :  { %v2394_v42 = vadd.f32 %v1451_v41, %v2808_v37  ;;  %v2287_v43 = vpop.f32.mrb[7].mxu1  ;;  %v753_v41 = vmul.f32 %v2875_v35, %v749_v27 }
0x11c7   :  { %v747_v43 = vadd.f32 %v746_v25, %v557_v29 }
0x11c8   :  { %2477 = vtanh.f32 %v2394_v42  ;;  %v2103_v45 = vmul.f32 -1.442695, %v2394_v42  ;;  %v1120_v42 = vmul.f32 %v2914_v13, %v939_v30  ;;  %v1755_v13 = vld [vmem:[%s3049_s8] sm:$0xff] }
0x11c9   :  { %v937_v52 = vadd.f32 %v936_v34, %v747_v43 }
0x11ca   :  { %2479 = vpow2.f32 %v2103_v45 }
0x11cb   :  { %v1121_v55 = vadd.f32 %v1120_v42, %v937_v52 }
0x11cd   :  { %v1303_v35 = vadd.f32 %v1302_v31, %v1121_v55 }
0x11d2   :  { %v2478_v44 = vpop.eup %2477 }
0x11d3   :  { %1465 = vrot.lane.b32.xlu0 %v2478_v44, %s2607_s3  ;;  %v943_v44 = vmul.f32 %v2900_v56, %v939_v30 }
0x11d4   :  { %v2480_v46 = vpop.eup %2479 }
0x11d5   :  { %v1459_v47 = vadd.f32 1.0, %v2480_v46  ;;  %v1125_v46 = vmul.f32 %v2922_v15, %v931_v9  ;;  %v1956_v9 = vld [vmem:[%s3052_s11] sm:$0x7]  ;;  %s2613_s11 = smov 48  }
0x11d7   :  { %2481 = vrcp.f32 %v1459_v47 }
0x11e1   :  { %v2482_v48 = vpop.eup %2481 }
0x11e2   :  { %v1463_v23 = vmul.f32 %v2482_v48, %v1291_v28  ;;  %v369_v28 = vld [vmem:[#allocation3 + $0xe] sm:$0x3] }
0x11e3   :  { %v373_v10 = vmul.f32 %v2827_v53, %v369_v28  ;;  %v1756_v53 = vld [vmem:[%s3049_s8 + $0x8] sm:$0xff] }
0x11e5   :  { %v564_v45 = vadd.f32 %v563_v0, %v373_v10 }
0x11e7   :  { %v754_v47 = vadd.f32 %v753_v41, %v564_v45 }
0x1245   :  { %v1466_v49 = vpop.permute.xlu0 %1465 }
0x1246   :  { %v1468_v50 = vmul.f32 %v2482_v48, %v1466_v49  ;;  %v944_v49 = vadd.f32 %v943_v44, %v754_v47 }
0x1248   :  { %1470 = vrot.lane.b32.xlu1 %v1468_v50, %s2608_s14  ;;  %v1126_v15 = vadd.f32 %v1125_v46, %v944_v49 }
0x12ba   :  { %v1471_v32 = vpop.permute.xlu1 %1470 }
0x12bb   :  { %v1473_v33 = vadd.f32 %v1471_v32, %v1463_v23 }
0x12bd   :  { %2483 = vtanh.f32 %v1473_v33 }
0x12c7   :  { %v2484_v37 = vpop.eup %2483 }
0x12c8   :  { %1476 = vrot.lane.b32.xlu0 %v2484_v37, %s2609_s17 }
0x133a   :  { %v1477_v51 = vpop.permute.xlu0 %1476 }
0x133b   :  { %v1479_v54 = vmul.f32 %v2482_v48, %v1477_v51  ;;  %v1307_v48 = vmul.f32 %v2944_v40, %v741_v20 }
0x133d   :  { %1486 = vrot.lane.b32.xlu0 %v1479_v54, %s2608_s14  ;;  %1481 = vrot.lane.b32.xlu1 %v1479_v54, %s2610_s18  ;;  %v1308_v37 = vadd.f32 %v1307_v48, %v1126_v15 }
0x13af   :  { %v1482_v57 = vpop.permute.xlu1 %1481  ;;  %v2961_v58 = vpop.permute.xlu0 %1486 }
0x13b0   :  { %2293 = vmatmul.mubr.msk.f32.vlgmr.msra.gmra.mrb[8].mxu0 %vm191_vm3, %v1482_v57  ;;  %v1484_v11 = vmul.f32 %v1482_v57, %v559_v24  ;;  %v1489_v50 = vmul.f32 %v2961_v58, %v551_v19  ;;  %v1877_v24 = vld [vmem:[%s3051_s10] sm:$0xf]  ;;  %s2612_s10 = smov 64  }
0x13b1   :  { %2381 = vmatpush3.bf16.msra.mxu0 %v2756_v14  ;;  %2299 = vmatprep.mubr.msk.f32.mxu0 %vm2605_vm0, %v2606_v1 }
0x13b2   :  { %2316 = vmatprep.subr.mxu0 %v2606_v1  ;;  %v1485_v23 = vadd.f32 %v1484_v11, %v1303_v35  ;;  %v1490_v54 = vadd.f32 %v1489_v50, %v1308_v37 }
0x13b8   :  { %2300 = vmatmul.mubr.msk.f32.vlgmr.msra.gmra.mrb[8].mxu0 %vm191_vm3, %v2961_v58  ;;  %v2107_v58 = vld [vmem:[%s3048_s7] ss:$0 sm:$0xff]  ;;  %s2611_s7 = smov 124  }
0x13b9   :  { %2318 = vmatprep.mubr.msk.f32.mxu0 %vm2605_vm0, %v2606_v1  ;;  %2317 = vmatpush3.msk.msra.mxu0 %vm1882_vm8, %v1877_v24 }
0x148b   :  { %v1633_v59 = vpop.f32.mrb[8].mxu0 }
0x148c   :  { %v2395_v60 = vadd.f32 %v1633_v59, %v2812_v38  ;;  %v2301_v61 = vpop.f32.mrb[9].mxu0 }
0x148e   :  { %2485 = vtanh.f32 %v2395_v60  ;;  %v2106_v14 = vmul.f32 -1.442695, %v2395_v60 }
0x1490   :  { %2487 = vpow2.f32 %v2106_v14 }
0x1498   :  { %v2486_v62 = vpop.eup %2485 }
0x1499   :  { %1647 = vrot.lane.b32.xlu1 %v2486_v62, %s2607_s3  ;;  %v2109_v62 = vld [vmem:[%s3050_s9] ss:$0 sm:$0xff] }
0x149a   :  { %v2488_v63 = vpop.eup %2487 }
0x149b   :  { %v1641_v2 = vadd.f32 1.0, %v2488_v63 }
0x149d   :  { %2489 = vrcp.f32 %v1641_v2 }
0x14a7   :  { %v2490_v3 = vpop.eup %2489 }
0x14a8   :  { %v1645_v6 = vmul.f32 %v2490_v3, %v1473_v33  ;;  %v2386_v33 = vpack.c.bf16 %v1756_v53, %v1755_v13 }
0x150b   :  { %v1648_v4 = vpop.permute.xlu1 %1647 }
0x150c   :  { %v1650_v5 = vmul.f32 %v2490_v3, %v1648_v4 }
0x150e   :  { %1652 = vrot.lane.b32.xlu0 %v1650_v5, %s2608_s14 }
0x1580   :  { %v1653_v7 = vpop.permute.xlu0 %1652 }
0x1581   :  { %v1655_v36 = vadd.f32 %v1653_v7, %v1645_v6 }
0x1583   :  { %2491 = vtanh.f32 %v1655_v36 }
0x158d   :  { %v2492_v38 = vpop.eup %2491 }
0x158e   :  { %1658 = vrot.lane.b32.xlu1 %v2492_v38, %s2609_s17 }
0x1600   :  { %v1659_v17 = vpop.permute.xlu1 %1658 }
0x1601   :  { %v1661_v18 = vmul.f32 %v2490_v3, %v1659_v17 }
0x1603   :  { %1668 = vrot.lane.b32.xlu1 %v1661_v18, %s2608_s14  ;;  %1663 = vrot.lane.b32.xlu0 %v1661_v18, %s2610_s18 }
0x1675   :  { %v1669_v56 = vpop.permute.xlu1 %1668  ;;  %v1664_v39 = vpop.permute.xlu0 %1663 }
0x1676   :  { %v1666_v32 = vmul.f32 %v1664_v39, %v369_v28  ;;  %v1671_v40 = vmul.f32 %v1669_v56, %v361_v21 }
0x1678   :  { %v1667_v51 = vadd.f32 %v1666_v32, %v1485_v23  ;;  %v3002_v57 = vadd.f32 %v1671_v40, %v1490_v54 }
0x167a   :  { %2307 = vmatmul.mubr.msk.f32.vlgmr.msra.gmra.mrb[8].mxu1 %vm191_vm3, %v1667_v51  ;;  %2037 = vst.msk [vmem:[#allocation9] sm:$0x3] %vm2036_vm4, %v1667_v51 }
0x167b   :  { %2387 = vmatpush3.bf16.msra.mxu1 %v2386_v33  ;;  %2313 = vmatprep.mubr.msk.f32.mxu1 %vm2605_vm0, %v2606_v1 }
0x167c   :  { %2321 = vmatprep.subr.mxu1 %v2606_v1 }
0x167e   :  { %2314 = vmatmul.mubr.msk.f32.vlgmr.msra.gmra.mrb[10].mxu1 %vm191_vm3, %v3002_v57 }
0x167f   :  { %2323 = vmatprep.mubr.msk.f32.mxu1 %vm2605_vm0, %v2606_v1  ;;  %2322 = vmatpush3.msk.msra.mxu1 %vm1961_vm9, %v1956_v9  ;;  %vm2064_vm0 = vcmask 673408  }
0x174d   :  { %v1751_v59 = vpop.f32.mrb[8].mxu1 }
0x174e   :  { %v1752_v60 = vadd.f32 %v2107_v58, %v1751_v59  ;;  %v2308_v61 = vpop.f32.mrb[9].mxu1 }
0x1750   :  { %v1838_v14 = vsel %vm1837_vm5, %v1752_v60, -inf  ;;  %v1850_v4 = vsel %vm1849_vm7, %v1752_v60, -inf }
0x1751   :  { %1839 = vmax.xlane.f32.xlu0 %v1838_v14  ;;  %v1833_v63 = vpop.f32.mrb[10].mxu1 }
0x1752   :  { %v1834_v2 = vadd.f32 %v2109_v62, %v1833_v63  ;;  %v2315_v3 = vpop.f32.mrb[11].mxu1 }
0x1754   :  { %v1866_v1 = vsel %vm1860_vm6, %v1834_v2, -inf }
0x1755   :  { %1867 = vmax.xlane.f32.xlu1 %v1866_v1 }
0x1759   :  { %1851 = vmax.xlane.f32.xlu1 %v1850_v4 }
0x17de   :  { %v1840_v5 = vpop.xlane.xlu0 %1839 }
0x17df   :  { %v1841_v6 = vsub.f32 %v1752_v60, %v1840_v5 }
0x17e1   :  { %v1842_v7 = vmul.f32 1.442695, %v1841_v6 }
0x17e2   :  { %v1868_v36 = vpop.xlane.xlu1 %1867 }
0x17e3   :  { %2493 = vpow2.f32 %v1842_v7  ;;  %v1869_v38 = vsub.f32 %v1834_v2, %v1868_v36 }
0x17e5   :  { %v1870_v8 = vmul.f32 1.442695, %v1869_v38 }
0x17e6   :  { %v1852_v19 = vpop.xlane.xlu1 %1851 }
0x17e7   :  { %2495 = vpow2.f32 %v1870_v8  ;;  %v1853_v20 = vsub.f32 %v1752_v60, %v1852_v19 }
0x17e9   :  { %v1854_v21 = vmul.f32 1.442695, %v1853_v20 }
0x17eb   :  { %2497 = vpow2.f32 %v1854_v21 }
0x17ed   :  { %v2494_v12 = vpop.eup %2493 }
0x17ee   :  { %v1844_v16 = vsel %vm1837_vm5, %v2494_v12, 0.0 }
0x17ef   :  { %1845 = vadd.xlane.f32.xlu0 %v1844_v16 }
0x17f1   :  { %v2496_v17 = vpop.eup %2495 }
0x17f2   :  { %v1872_v18 = vsel %vm1860_vm6, %v2496_v17, 0.0 }
0x17f3   :  { %1873 = vadd.xlane.f32.xlu0 %v1872_v18 }
0x17f5   :  { %v2498_v22 = vpop.eup %2497 }
0x1809   :  { %1857 = vrot.lane.b32.xlu0 %v2498_v22, %s2611_s7 }
0x187c   :  { %v1846_v25 = vpop.xlane.xlu0 %1845 }
0x187d   :  { %2499 = vrcp.f32 %v1846_v25 }
0x1880   :  { %v1874_v26 = vpop.xlane.xlu0 %1873 }
0x1881   :  { %2501 = vrcp.f32 %v1874_v26 }
0x1884   :  { %v1858_v27 = vpop.permute.xlu0 %1857 }
0x1885   :  { %v1861_v28 = vsel %vm1860_vm6, %v1858_v27, 0.0 }
0x1886   :  { %1862 = vadd.xlane.f32.xlu1 %v1861_v28 }
0x1887   :  { %v2500_v0 = vpop.eup %2499 }
0x1888   :  { %v1848_v34 = vmul.f32 %v2500_v0, %v2494_v12 }
0x188a   :  { %2319 = vmatmul.mubr.msk.f32.vlgmr.msra.gmra.mrb[10].mxu0 %vm1878_vm10, %v1848_v34 }
0x188b   :  { %v2502_v29 = vpop.eup %2501 }
0x188c   :  { %v1876_v30 = vmul.f32 %v2502_v29, %v2496_v17 }
0x188e   :  { %2324 = vmatmul.mubr.msk.f32.vlgmr.msra.gmra.mrb[12].mxu1 %vm1957_vm11, %v1876_v30 }
0x1897   :  { %2038 = vrot.lane.b32.xlu1 %v3002_v57, %s2608_s14 }
0x1913   :  { %v1863_v41 = vpop.xlane.xlu1 %1862 }
0x1914   :  { %2503 = vrcp.f32 %v1863_v41 }
0x1917   :  { %v2039_v42 = vpop.permute.xlu1 %2038 }
0x1918   :  { %2042 = vst.msk [vmem:[#allocation9] sm:$0x3] %vm2041_vm12, %v2039_v42 }
0x191e   :  { %v2504_v44 = vpop.eup %2503 }
0x191f   :  { %v1865_v45 = vmul.f32 %v2504_v44, %v2498_v22 }
0x195d   :  { %v1952_v43 = vpop.f32.mrb[10].mxu0 }
0x195e   :  { %v2320_v10 = vpop.f32.mrb[11].mxu0  ;;  %2044 = vrot.lane.b32.xlu0 %v1952_v43, %s2609_s17 }
0x1961   :  { %v2031_v31 = vpop.f32.mrb[12].mxu1 }
0x1962   :  { %2055 = vrot.lane.b32.xlu0 %v1876_v30, %s2612_s10  ;;  %2050 = vrot.lane.b32.xlu1 %v2031_v31, %s2613_s11  ;;  %v2325_v52 = vpop.f32.mrb[13].mxu1 }
0x1966   :  { %2061 = vrot.lane.b32.xlu1 %v1865_v45, %s2614_s4 }
0x19d0   :  { %v2045_v46 = vpop.permute.xlu0 %2044 }
0x19d1   :  { %2048 = vst.msk [vmem:[#allocation9] sm:$0x3] %vm2047_vm13, %v2045_v46 }
0x19d4   :  { %v2056_v11 = vpop.permute.xlu0 %2055  ;;  %v2051_v47 = vpop.permute.xlu1 %2050 }
0x19d5   :  { %2054 = vst.msk [vmem:[#allocation9] sm:$0x3] %vm2053_vm14, %v2051_v47 }
0x19d6   :  { %2059 = vst.msk [vmem:[#allocation9] sm:$0x3] %vm2058_vm15, %v2056_v11 }
0x19d8   :  { %v2062_v55 = vpop.permute.xlu1 %2061 }
0x19d9   :  { %2065 = vst.msk [vmem:[#allocation9] sm:$0x3] %vm2064_vm0, %v2062_v55 }
0x19da   :  { %2582 = shalt.err (!%p2579_p0)
}
0x19db   :  { %s2583_s13 = scalar_lea.hbm %s3053_s12, 32 }
0x19dc   :  { %p2584_p1 = scmp.ne.s32.totalorder %s3053_s12, %s2583_s13  ;;  %p2587_p2 = scmp.lt.u32.totalorder %s2583_s13, %s3053_s12 }
0x19de   :  { %p2589_p3 = pnand %p2587_p2, %p2584_p1 }
0x19e0   :  { %2592 = shalt.err (!%p2589_p3)
}
0x19e1   :  { %2075 = dma.vmem_to_hbm [thread:$0]  %s2073_s29, 32, %s3053_s12, [#allocation5]  }
0x19e2   :  { %2597 = dma.done.wait [#allocation5], 32  }
0x19e3   :  { %2598 = vsyncadd [#allocation5], 4294967264 }
0x19e4   :  { %2079 = vsyncpa [#allocation4], 1 }
0x19e5   :  { %2080 = vsyncpa [#allocation7], 1 }
0x19e6   :  { %2081 = vsyncpa [#allocation5], 1 }

</bundles_post_ra>
